<compile_context>
chip_gen: v7x
topology: tpu7x:2x2x1
jax: 0.10.0
libtpu: 0.0.40
codegen_flags: <defaults>
</compile_context>

<pallas_src>
import functools

import jax
import jax.numpy as jnp
from jax.experimental import pallas as pl
from jax.experimental.pallas import tpu as pltpu

# ----------------------------- config (synthetic tlens model) -----------------------------
BATCH = 2
POS = 8
BP = BATCH * POS             # 16 total rows
D_MODEL = 32
N_HEADS = 4
D_HEAD = D_MODEL // N_HEADS  # 8
D_MLP = 4 * D_MODEL          # 128 (lane-dense)
VOCAB = 128                  # lane-dense
N_LAYERS = 2
N_DICT = 4 * D_MODEL         # 128, dict_size_to_input_ratio = 4.0 (lane-dense)
LN_EPS = 1e-5
MSE_COEFF = 1.0
SPARSITY_COEFF = 0.01

LANES = 128
LOSS_LANES = (LANES - 3 * D_MODEL) // 2    # 16 lanes each for mse / sparsity in the out slab

# vec_slab row layout (all small LN/bias params packed into one (VEC_ROWS, 128) slab)
VEC_PER_LAYER = 8
R_LN1W, R_LN1B, R_BQKV, R_BO, R_LN2W, R_LN2B, R_BIN, R_BOUT = range(VEC_PER_LAYER)
R_LNFW = N_LAYERS * VEC_PER_LAYER + 0   # 16
R_LNFB = N_LAYERS * VEC_PER_LAYER + 1   # 17
R_BU = N_LAYERS * VEC_PER_LAYER + 2     # 18
R_BENC = N_LAYERS * VEC_PER_LAYER + 3   # 19
R_BDEC = N_LAYERS * VEC_PER_LAYER + 4   # 20
VEC_ROWS = 24                            # padded to a multiple of 8 sublanes

SAE_POSITION = "blocks.0.hook_resid_post"
HOOK0 = "blocks.0.hook_resid_post"
HOOK1 = "blocks.1.hook_resid_post"


# ----------------------------- in-kernel helpers -----------------------------
def _layernorm(x, w, b):
    mu = jnp.mean(x, axis=-1, keepdims=True)
    xc = x - mu
    var = jnp.mean(xc * xc, axis=-1, keepdims=True)
    return xc * jax.lax.rsqrt(var + LN_EPS) * w + b


# ----------------------------- fused forward kernel -----------------------------
def fused_forward_kernel(tok_ref, pos_ref, vec_ref, w_attn_ref, wA_ref, wB_ref,
                         slab_ref, c_ref, logits_ref,
                         *, apply_sae, modify_output, compute_loss):
    f32 = jnp.float32

    def vrow(r, width):
        # static slice of the packed LN/bias slab -> (1, width)
        return vec_ref[r:r + 1, 0:width]

    # Additive causal-mask bias for one sequence (one sequence per grid step).
    ri = jax.lax.broadcasted_iota(jnp.int32, (POS, POS), 0)
    ci = jax.lax.broadcasted_iota(jnp.int32, (POS, POS), 1)
    mask_bias = jnp.where(ri >= ci, 0.0, -1e30).astype(f32)

    # In-kernel token embedding: one-hot(tokens) @ tok_emb  (no XLA gather / resid HBM trip).
    vocab_iota = jax.lax.broadcasted_iota(jnp.int32, (POS, VOCAB), 1)
    onehot = (vocab_iota == tok_ref[...]).astype(f32)              # (POS, VOCAB)
    tok_emb = wB_ref[3]                                            # (VOCAB, D_MODEL)
    x = jnp.dot(onehot, tok_emb, preferred_element_type=f32) + pos_ref[...]

    def transformer_block(x, l):
        base = l * VEC_PER_LAYER
        ln1_w = vrow(base + R_LN1W, D_MODEL)
        ln1_b = vrow(base + R_LN1B, D_MODEL)
        b_qkv = vrow(base + R_BQKV, 3 * D_MODEL)
        bo = vrow(base + R_BO, D_MODEL)
        ln2_w = vrow(base + R_LN2W, D_MODEL)
        ln2_b = vrow(base + R_LN2B, D_MODEL)
        b_in = vrow(base + R_BIN, D_MLP)
        b_out = vrow(base + R_BOUT, D_MODEL)

        w_attn_l = w_attn_ref[l]                    # (D_MODEL, 128)
        w_qkv = w_attn_l[:, 0:3 * D_MODEL]          # fused q|k|v (scale folded into q part)
        wo = w_attn_l[:, 3 * D_MODEL:LANES]         # (D_MODEL, D_MODEL)
        w_in = wA_ref[l]                            # (D_MODEL, D_MLP)
        w_out = wB_ref[l]                           # (D_MLP, D_MODEL)

        xn = _layernorm(x, ln1_w, ln1_b)
        qkv = jnp.dot(xn, w_qkv, preferred_element_type=f32) + b_qkv   # one MXU push for q,k,v

        heads = []                                  # per-head contexts stay in vregs
        for h in range(N_HEADS):                    # static unroll over heads
            qh = qkv[:, h * D_HEAD:(h + 1) * D_HEAD]
            kh = qkv[:, D_MODEL + h * D_HEAD:D_MODEL + (h + 1) * D_HEAD]
            vh = qkv[:, 2 * D_MODEL + h * D_HEAD:2 * D_MODEL + (h + 1) * D_HEAD]
            s = jax.lax.dot_general(qh, kh, (((1,), (1,)), ((), ())),
                                    preferred_element_type=f32) + mask_bias
            m = jnp.max(s, axis=-1, keepdims=True)
            p = jnp.exp(s - m)
            p = p * pl.reciprocal(jnp.sum(p, axis=-1, keepdims=True), approx=True)
            heads.append(jnp.dot(p, vh, preferred_element_type=f32))
        z = jnp.concatenate(heads, axis=-1)         # (POS, D_MODEL), no scratch round-trip
        attn = jnp.dot(z, wo, preferred_element_type=f32) + bo

        resid_mid = x + attn
        xn2 = _layernorm(resid_mid, ln2_w, ln2_b)
        h_pre = jnp.dot(xn2, w_in, preferred_element_type=f32) + b_in
        # TODO(synk): tanh-approx GELU; matches gelu_new-style tlens models, not exact erf GELU.
        h_act = jax.nn.gelu(h_pre, approximate=True)
        mlp = jnp.dot(h_act, w_out, preferred_element_type=f32) + b_out
        return resid_mid + mlp

    # ----- block 0, hook: blocks.0.hook_resid_post -----
    resid0 = transformer_block(x, 0)

    # ----- ReluSAE encode / decode + losses (statically gated) -----
    zero_loss = jnp.zeros((1, 1), f32)
    if apply_sae:
        w_enc = wA_ref[2]                            # (D_MODEL, N_DICT)
        w_dec = wB_ref[2]                            # (N_DICT, D_MODEL)
        b_enc = vrow(R_BENC, N_DICT)
        b_dec = vrow(R_BDEC, D_MODEL)
        c = jnp.maximum(jnp.dot(resid0, w_enc, preferred_element_type=f32) + b_enc, 0.0)
        recon = jnp.dot(c, w_dec, preferred_element_type=f32) + b_dec
        c_ref[...] = c
        if compute_loss:
            # Per-sequence partial losses; the /(BP*D_MODEL) and /BP factors are for the FULL
            # batch so summing partials in the wrapper yields the batch mean / per-token L1.
            # TODO(synk): confirm normalization matches the torch ReluSAE loss definition.
            diff = recon - resid0
            mse = (MSE_COEFF / (BP * D_MODEL)) * jnp.sum(diff * diff, keepdims=True)
            sparsity = (SPARSITY_COEFF / BP) * jnp.sum(jnp.abs(c), keepdims=True)
        else:
            mse, sparsity = zero_loss, zero_loss
    else:
        c_ref[...] = jnp.zeros_like(c_ref)
        recon = jnp.zeros_like(resid0)
        mse, sparsity = zero_loss, zero_loss

    # ----- block 1, hook: blocks.1.hook_resid_post -----
    x1 = recon if (apply_sae and modify_output) else resid0   # static python flags
    resid1 = transformer_block(x1, 1)

    # ----- final layernorm + unembed -----
    xn_f = _layernorm(resid1, vrow(R_LNFW, D_MODEL), vrow(R_LNFB, D_MODEL))
    logits_ref[...] = (jnp.dot(xn_f, wA_ref[3], preferred_element_type=f32)
                       + vrow(R_BU, VOCAB))

    # ----- single lane-dense output slab: resid0 | recon | resid1 | mse | sparsity -----
    mse_col = jnp.broadcast_to(mse, (POS, LOSS_LANES))
    sp_col = jnp.broadcast_to(sparsity, (POS, LOSS_LANES))
    slab_ref[...] = jnp.concatenate([resid0, recon, resid1, mse_col, sp_col], axis=-1)


def fused_forward(tokens_flat, kp, *, apply_sae, modify_output, compute_loss):
    kernel = functools.partial(fused_forward_kernel, apply_sae=apply_sae,
                               modify_output=modify_output, compute_loss=compute_loss)
    out_shape = (
        jax.ShapeDtypeStruct((BP, LANES), jnp.float32),    # packed slab (resids/recon/losses)
        jax.ShapeDtypeStruct((BP, N_DICT), jnp.float32),   # SAE codes c
        jax.ShapeDtypeStruct((BP, VOCAB), jnp.float32),    # logits
    )
    in_specs = (
        pl.BlockSpec((POS, 1), lambda b: (b, 0)),                      # tokens (per sequence)
        pl.BlockSpec((POS, D_MODEL), lambda b: (0, 0)),                # pos_emb
        pl.BlockSpec((VEC_ROWS, LANES), lambda b: (0, 0)),             # packed LN/bias slab
        pl.BlockSpec((N_LAYERS, D_MODEL, LANES), lambda b: (0, 0, 0)), # qkv|wo weights
        pl.BlockSpec((4, D_MODEL, LANES), lambda b: (0, 0, 0)),        # w_in[0,1], w_enc, w_u
        pl.BlockSpec((4, LANES, D_MODEL), lambda b: (0, 0, 0)),        # w_out[0,1], w_dec, tok_emb
    )
    out_specs = (
        pl.BlockSpec((POS, LANES), lambda b: (b, 0)),
        pl.BlockSpec((POS, N_DICT), lambda b: (b, 0)),
        pl.BlockSpec((POS, VOCAB), lambda b: (b, 0)),
    )
    return pl.pallas_call(
        kernel,
        out_shape=out_shape,
        grid=(BATCH,),
        in_specs=in_specs,
        out_specs=out_specs,
        compiler_params=pltpu.CompilerParams(dimension_semantics=("parallel",)),
    )(tokens_flat, kp["pos_emb"], kp["vec_slab"], kp["w_attn"], kp["w_32x128"], kp["w_128x32"])


# ----------------------------- parameters (deterministic) -----------------------------
def init_params(key):
    def nrm(k, shape, scale):
        return scale * jax.random.normal(k, shape, dtype=jnp.float32)

    keys = iter(jax.random.split(key, 16))
    params = {
        "tok_emb": nrm(next(keys), (VOCAB, D_MODEL), 0.02),
        "pos_emb": nrm(next(keys), (POS, D_MODEL), 0.02),
        "ln1_w": jnp.ones((N_LAYERS, 1, D_MODEL), jnp.float32),
        "ln1_b": jnp.zeros((N_LAYERS, 1, D_MODEL), jnp.float32),
        "wq": nrm(next(keys), (N_LAYERS, D_MODEL, D_MODEL), 0.02),
        "bq": jnp.zeros((N_LAYERS, 1, D_MODEL), jnp.float32),
        "wk": nrm(next(keys), (N_LAYERS, D_MODEL, D_MODEL), 0.02),
        "bk": jnp.zeros((N_LAYERS, 1, D_MODEL), jnp.float32),
        "wv": nrm(next(keys), (N_LAYERS, D_MODEL, D_MODEL), 0.02),
        "bv": jnp.zeros((N_LAYERS, 1, D_MODEL), jnp.float32),
        "wo": nrm(next(keys), (N_LAYERS, D_MODEL, D_MODEL), 0.02),
        "bo": jnp.zeros((N_LAYERS, 1, D_MODEL), jnp.float32),
        "ln2_w": jnp.ones((N_LAYERS, 1, D_MODEL), jnp.float32),
        "ln2_b": jnp.zeros((N_LAYERS, 1, D_MODEL), jnp.float32),
        "w_in": nrm(next(keys), (N_LAYERS, D_MODEL, D_MLP), 0.02),
        "b_in": jnp.zeros((N_LAYERS, 1, D_MLP), jnp.float32),
        "w_out": nrm(next(keys), (N_LAYERS, D_MLP, D_MODEL), 0.02),
        "b_out": jnp.zeros((N_LAYERS, 1, D_MODEL), jnp.float32),
        "lnf_w": jnp.ones((1, D_MODEL), jnp.float32),
        "lnf_b": jnp.zeros((1, D_MODEL), jnp.float32),
        "w_u": nrm(next(keys), (D_MODEL, VOCAB), 0.02),
        "b_u": jnp.zeros((1, VOCAB), jnp.float32),
    }
    # ReluSAE at blocks.0.hook_resid_post — decoder rows unit-normalised.
    w_dec = nrm(next(keys), (N_DICT, D_MODEL), 1.0)
    w_dec = w_dec / jnp.linalg.norm(w_dec, axis=-1, keepdims=True)
    params["sae"] = {
        "w_enc": nrm(next(keys), (D_MODEL, N_DICT), 0.1),
        "b_enc": jnp.zeros((1, N_DICT), jnp.float32),
        "w_dec": w_dec,
        "b_dec": jnp.zeros((1, D_MODEL), jnp.float32),
    }
    return params


def pack_params(p):
    """Pack raw params into the 6 lane-dense kernel inputs."""
    sae = p["sae"]
    qk_scale = 1.0 / (D_HEAD ** 0.5)
    # Fused q|k|v with 1/sqrt(d_head) folded into BOTH the q weights and q bias.
    w_qkv = jnp.concatenate([p["wq"] * qk_scale, p["wk"], p["wv"]], axis=-1)     # (L, 32, 96)
    b_qkv = jnp.concatenate([p["bq"] * qk_scale, p["bk"], p["bv"]], axis=-1)     # (L, 1, 96)
    w_attn = jnp.concatenate([w_qkv, p["wo"]], axis=-1)                          # (L, 32, 128)
    w_32x128 = jnp.stack([p["w_in"][0], p["w_in"][1], sae["w_enc"], p["w_u"]])   # (4, 32, 128)
    w_128x32 = jnp.stack([p["w_out"][0], p["w_out"][1], sae["w_dec"], p["tok_emb"]])  # (4,128,32)

    def pad_row(v):
        v = v.reshape(1, -1)
        return jnp.pad(v, ((0, 0), (0, LANES - v.shape[-1])))

    rows = []
    for l in range(N_LAYERS):
        rows += [pad_row(p["ln1_w"][l]), pad_row(p["ln1_b"][l]), pad_row(b_qkv[l]),
                 pad_row(p["bo"][l]), pad_row(p["ln2_w"][l]), pad_row(p["ln2_b"][l]),
                 pad_row(p["b_in"][l]), pad_row(p["b_out"][l])]
    rows += [pad_row(p["lnf_w"]), pad_row(p["lnf_b"]), pad_row(p["b_u"]),
             pad_row(sae["b_enc"]), pad_row(sae["b_dec"])]
    while len(rows) < VEC_ROWS:
        rows.append(jnp.zeros((1, LANES), jnp.float32))
    vec_slab = jnp.concatenate(rows, axis=0)                                      # (24, 128)

    return {"pos_emb": p["pos_emb"], "vec_slab": vec_slab, "w_attn": w_attn,
            "w_32x128": w_32x128, "w_128x32": w_128x32}


# ----------------------------- forward (mirrors SAETransformer.forward) -----------------------------
def sae_transformer_forward(tokens, kparams, sae_positions, cache_positions=None,
                            modify_output=False, compute_loss=True):
    all_hook_names = set(list(sae_positions) + list(cache_positions or []))
    apply_sae = SAE_POSITION in sae_positions

    tokens_flat = tokens.reshape(BP, 1).astype(jnp.int32)
    slab, c, logits = fused_forward(tokens_flat, kparams, apply_sae=apply_sae,
                                    modify_output=modify_output, compute_loss=compute_loss)

    resid0 = slab[:, 0:D_MODEL].reshape(BATCH, POS, D_MODEL)
    recon = slab[:, D_MODEL:2 * D_MODEL].reshape(BATCH, POS, D_MODEL)
    resid1 = slab[:, 2 * D_MODEL:3 * D_MODEL].reshape(BATCH, POS, D_MODEL)
    c_b = c.reshape(BATCH, POS, N_DICT)
    logits_b = logits.reshape(BATCH, POS, VOCAB)

    slab_b = slab.reshape(BATCH, POS, LANES)
    mse = jnp.sum(slab_b[:, 0, 3 * D_MODEL])                    # sum of per-sequence partials
    sparsity = jnp.sum(slab_b[:, 0, 3 * D_MODEL + LOSS_LANES])

    activation_cache, sae_outputs, loss_outputs = {}, {}, {}
    if HOOK0 in all_hook_names:
        activation_cache[HOOK0] = recon if (apply_sae and modify_output) else resid0
    if HOOK1 in all_hook_names:
        activation_cache[HOOK1] = resid1
    if apply_sae:
        sae_outputs[SAE_POSITION] = {"input": resid0, "c": c_b, "output": recon}
        if compute_loss:
            loss_outputs[SAE_POSITION] = {"mse": mse, "sparsity": sparsity,
                                          "loss": mse + sparsity}

    return {"logits": logits_b, "activations": activation_cache,
            "sae_outputs": sae_outputs, "loss_outputs": loss_outputs}
    # TODO(synk): stop_at_layer / arbitrary TransformerLens hook names beyond
    # blocks.{l}.hook_resid_post are not reproduced (no HookedTransformer here).
    # TODO(synk): generate() (host-side autoregressive sampling loop) not implemented.


# ----------------------------- main -----------------------------
if __name__ == "__main__":
    key = jax.random.PRNGKey(0)
    pkey, tkey = jax.random.split(key)
    params = init_params(pkey)
    kparams = pack_params(params)
    tokens = jax.random.randint(tkey, (BATCH, POS), 0, VOCAB, dtype=jnp.int32)

    out = sae_transformer_forward(
        tokens, kparams,
        sae_positions=[SAE_POSITION],
        cache_positions=["blocks.1.hook_resid_post"],
        modify_output=True,
        compute_loss=True,
    )

    logits = jax.block_until_ready(out["logits"])
    jax.block_until_ready(out["sae_outputs"][SAE_POSITION]["output"])
    loss = jax.block_until_ready(out["loss_outputs"][SAE_POSITION]["loss"])

    assert logits.shape == (BATCH, POS, VOCAB)
    assert out["sae_outputs"][SAE_POSITION]["c"].shape == (BATCH, POS, N_DICT)
    assert out["activations"]["blocks.1.hook_resid_post"].shape == (BATCH, POS, D_MODEL)
    assert bool(jnp.all(jnp.isfinite(logits)))
    assert bool(jnp.isfinite(loss))
    print("KERNEL_OK")
</pallas_src>

<mosaic_0001>
module attributes {stable_mosaic.version = 11 : i64} {
  func.func @fused_forward_kernel(%arg0: i32, %arg1: memref<8x1xi32, #tpu.memory_space<vmem>>, %arg2: memref<8x32xf32, #tpu.memory_space<vmem>>, %arg3: memref<24x128xf32, #tpu.memory_space<vmem>>, %arg4: memref<2x32x128xf32, #tpu.memory_space<vmem>>, %arg5: memref<4x32x128xf32, #tpu.memory_space<vmem>>, %arg6: memref<4x128x32xf32, #tpu.memory_space<vmem>>, %arg7: memref<8x128xf32, #tpu.memory_space<vmem>>, %arg8: memref<8x128xf32, #tpu.memory_space<vmem>>, %arg9: memref<8x128xf32, #tpu.memory_space<vmem>>) attributes {dimension_semantics = [#tpu.dimension_semantics<parallel>], iteration_bounds = array<i64: 2>, scalar_prefetch = 0 : i64, scratch_operands = 0 : i64, tpu.core_type = #tpu.core_type<tc>, window_params = [{transform_indices = @transform_0, window_bounds = array<i64: 8, 1>}, {pipeline_mode = #tpu.pipeline_mode<synchronous>, transform_indices = @transform_1, window_bounds = array<i64: 8, 32>}, {pipeline_mode = #tpu.pipeline_mode<synchronous>, transform_indices = @transform_2, window_bounds = array<i64: 24, 128>}, {pipeline_mode = #tpu.pipeline_mode<synchronous>, transform_indices = @transform_3, window_bounds = array<i64: 2, 32, 128>}, {pipeline_mode = #tpu.pipeline_mode<synchronous>, transform_indices = @transform_4, window_bounds = array<i64: 4, 32, 128>}, {pipeline_mode = #tpu.pipeline_mode<synchronous>, transform_indices = @transform_5, window_bounds = array<i64: 4, 128, 32>}, {transform_indices = @transform_6, window_bounds = array<i64: 8, 128>}, {transform_indices = @transform_7, window_bounds = array<i64: 8, 128>}, {transform_indices = @transform_8, window_bounds = array<i64: 8, 128>}]} {
    %0 = tpu.iota {dimensions = array<i32: 0>} : vector<8x8xi32>
    %1 = tpu.iota {dimensions = array<i32: 1>} : vector<8x8xi32>
    %2 = arith.cmpi sge, %0, %1 : vector<8x8xi32>
    %cst = arith.constant 0.000000e+00 : f32
    %cst_0 = arith.constant -1.000000e+30 : f32
    %3 = vector.broadcast %cst : f32 to vector<8x8xf32>
    %4 = vector.broadcast %cst_0 : f32 to vector<8x8xf32>
    %5 = arith.select %2, %3, %4 : vector<8x8xi1>, vector<8x8xf32>
    %6 = tpu.iota {dimensions = array<i32: 1>} : vector<8x128xi32>
    %c0 = arith.constant 0 : index
    %c0_1 = arith.constant 0 : index
    %7 = vector.load %arg1[%c0, %c0_1] : memref<8x1xi32, #tpu.memory_space<vmem>>, vector<8x1xi32>
    %8 = vector.broadcast %7 : vector<8x1xi32> to vector<8x128xi32>
    %9 = arith.cmpi eq, %6, %8 : vector<8x128xi32>
    %10 = arith.extui %9 : vector<8x128xi1> to vector<8x128xi32>
    %11 = arith.sitofp %10 : vector<8x128xi32> to vector<8x128xf32>
    %c3 = arith.constant 3 : index
    %c0_2 = arith.constant 0 : index
    %c0_3 = arith.constant 0 : index
    %12 = vector.load %arg6[%c3, %c0_2, %c0_3] : memref<4x128x32xf32, #tpu.memory_space<vmem>>, vector<1x128x32xf32>
    %13 = vector.shape_cast %12 : vector<1x128x32xf32> to vector<128x32xf32>
    %cst_4 = arith.constant dense<0.000000e+00> : vector<8x32xf32>
    %14 = tpu.matmul %11, %13, %cst_4 {dimension_numbers = #tpu.dot_dimension_numbers<[1], [0], [0], [1], [0, 0, 1, 1], [], []>} : vector<8x128xf32>, vector<128x32xf32>, vector<8x32xf32> -> vector<8x32xf32>
    %c0_5 = arith.constant 0 : index
    %c0_6 = arith.constant 0 : index
    %15 = vector.load %arg2[%c0_5, %c0_6] : memref<8x32xf32, #tpu.memory_space<vmem>>, vector<8x32xf32>
    %16 = arith.addf %14, %15 : vector<8x32xf32>
    %c0_7 = arith.constant 0 : index
    %c0_8 = arith.constant 0 : index
    %17 = vector.load %arg3[%c0_7, %c0_8] : memref<24x128xf32, #tpu.memory_space<vmem>>, vector<1x32xf32>
    %c1 = arith.constant 1 : index
    %c0_9 = arith.constant 0 : index
    %18 = vector.load %arg3[%c1, %c0_9] : memref<24x128xf32, #tpu.memory_space<vmem>>, vector<1x32xf32>
    %c2 = arith.constant 2 : index
    %c0_10 = arith.constant 0 : index
    %19 = vector.load %arg3[%c2, %c0_10] : memref<24x128xf32, #tpu.memory_space<vmem>>, vector<1x96xf32>
    %c3_11 = arith.constant 3 : index
    %c0_12 = arith.constant 0 : index
    %20 = vector.load %arg3[%c3_11, %c0_12] : memref<24x128xf32, #tpu.memory_space<vmem>>, vector<1x32xf32>
    %c4 = arith.constant 4 : index
    %c0_13 = arith.constant 0 : index
    %21 = vector.load %arg3[%c4, %c0_13] : memref<24x128xf32, #tpu.memory_space<vmem>>, vector<1x32xf32>
    %c5 = arith.constant 5 : index
    %c0_14 = arith.constant 0 : index
    %22 = vector.load %arg3[%c5, %c0_14] : memref<24x128xf32, #tpu.memory_space<vmem>>, vector<1x32xf32>
    %c6 = arith.constant 6 : index
    %c0_15 = arith.constant 0 : index
    %23 = vector.load %arg3[%c6, %c0_15] : memref<24x128xf32, #tpu.memory_space<vmem>>, vector<1x128xf32>
    %c7 = arith.constant 7 : index
    %c0_16 = arith.constant 0 : index
    %24 = vector.load %arg3[%c7, %c0_16] : memref<24x128xf32, #tpu.memory_space<vmem>>, vector<1x32xf32>
    %c0_17 = arith.constant 0 : index
    %c0_18 = arith.constant 0 : index
    %c0_19 = arith.constant 0 : index
    %25 = vector.load %arg4[%c0_17, %c0_18, %c0_19] : memref<2x32x128xf32, #tpu.memory_space<vmem>>, vector<1x32x128xf32>
    %26 = vector.shape_cast %25 : vector<1x32x128xf32> to vector<32x128xf32>
    %27 = vector.extract_strided_slice %26 {offsets = [0, 0], sizes = [32, 96], strides = [1, 1]} : vector<32x128xf32> to vector<32x96xf32>
    %28 = vector.extract_strided_slice %26 {offsets = [0, 96], sizes = [32, 32], strides = [1, 1]} : vector<32x128xf32> to vector<32x32xf32>
    %c0_20 = arith.constant 0 : index
    %c0_21 = arith.constant 0 : index
    %c0_22 = arith.constant 0 : index
    %29 = vector.load %arg5[%c0_20, %c0_21, %c0_22] : memref<4x32x128xf32, #tpu.memory_space<vmem>>, vector<1x32x128xf32>
    %30 = vector.shape_cast %29 : vector<1x32x128xf32> to vector<32x128xf32>
    %c0_23 = arith.constant 0 : index
    %c0_24 = arith.constant 0 : index
    %c0_25 = arith.constant 0 : index
    %31 = vector.load %arg6[%c0_23, %c0_24, %c0_25] : memref<4x128x32xf32, #tpu.memory_space<vmem>>, vector<1x128x32xf32>
    %32 = vector.shape_cast %31 : vector<1x128x32xf32> to vector<128x32xf32>
    %cst_26 = arith.constant dense<0.000000e+00> : vector<8xf32>
    %33 = vector.multi_reduction <add>, %16, %cst_26 [1] : vector<8x32xf32> to vector<8xf32>
    %34 = vector.shape_cast %33 : vector<8xf32> to vector<8x1xf32>
    %cst_27 = arith.constant 3.200000e+01 : f32
    %35 = vector.broadcast %cst_27 : f32 to vector<8x1xf32>
    %36 = arith.divf %34, %35 : vector<8x1xf32>
    %37 = vector.broadcast %36 : vector<8x1xf32> to vector<8x32xf32>
    %38 = arith.subf %16, %37 : vector<8x32xf32>
    %39 = arith.mulf %38, %38 : vector<8x32xf32>
    %cst_28 = arith.constant dense<0.000000e+00> : vector<8xf32>
    %40 = vector.multi_reduction <add>, %39, %cst_28 [1] : vector<8x32xf32> to vector<8xf32>
    %41 = vector.shape_cast %40 : vector<8xf32> to vector<8x1xf32>
    %cst_29 = arith.constant 3.200000e+01 : f32
    %42 = vector.broadcast %cst_29 : f32 to vector<8x1xf32>
    %43 = arith.divf %41, %42 : vector<8x1xf32>
    %cst_30 = arith.constant 9.99999974E-6 : f32
    %44 = vector.broadcast %cst_30 : f32 to vector<8x1xf32>
    %45 = arith.addf %43, %44 : vector<8x1xf32>
    %46 = math.rsqrt %45 : vector<8x1xf32>
    %47 = vector.broadcast %46 : vector<8x1xf32> to vector<8x32xf32>
    %48 = arith.mulf %38, %47 : vector<8x32xf32>
    %49 = vector.broadcast %17 : vector<1x32xf32> to vector<8x32xf32>
    %50 = arith.mulf %48, %49 : vector<8x32xf32>
    %51 = vector.broadcast %18 : vector<1x32xf32> to vector<8x32xf32>
    %52 = arith.addf %50, %51 : vector<8x32xf32>
    %cst_31 = arith.constant dense<0.000000e+00> : vector<8x96xf32>
    %53 = tpu.matmul %52, %27, %cst_31 {dimension_numbers = #tpu.dot_dimension_numbers<[1], [0], [0], [1], [0, 0, 1, 1], [], []>} : vector<8x32xf32>, vector<32x96xf32>, vector<8x96xf32> -> vector<8x96xf32>
    %54 = vector.broadcast %19 : vector<1x96xf32> to vector<8x96xf32>
    %55 = arith.addf %53, %54 : vector<8x96xf32>
    %56 = vector.extract_strided_slice %55 {offsets = [0, 0], sizes = [8, 8], strides = [1, 1]} : vector<8x96xf32> to vector<8x8xf32>
    %57 = vector.extract_strided_slice %55 {offsets = [0, 32], sizes = [8, 8], strides = [1, 1]} : vector<8x96xf32> to vector<8x8xf32>
    %58 = vector.extract_strided_slice %55 {offsets = [0, 64], sizes = [8, 8], strides = [1, 1]} : vector<8x96xf32> to vector<8x8xf32>
    %cst_32 = arith.constant dense<0.000000e+00> : vector<8x8xf32>
    %59 = tpu.matmul %56, %57, %cst_32 {dimension_numbers = #tpu.dot_dimension_numbers<[1], [1], [0], [0], [0, 0, 1, 0], [], []>} : vector<8x8xf32>, vector<8x8xf32>, vector<8x8xf32> -> vector<8x8xf32>
    %60 = arith.addf %59, %5 : vector<8x8xf32>
    %cst_33 = arith.constant dense<0xFF800000> : vector<8xf32>
    %61 = vector.multi_reduction <maximumf>, %60, %cst_33 [1] : vector<8x8xf32> to vector<8xf32>
    %62 = vector.shape_cast %61 : vector<8xf32> to vector<8x1xf32>
    %63 = vector.broadcast %62 : vector<8x1xf32> to vector<8x8xf32>
    %64 = arith.subf %60, %63 : vector<8x8xf32>
    %65 = math.exp %64 : vector<8x8xf32>
    %cst_34 = arith.constant dense<0.000000e+00> : vector<8xf32>
    %66 = vector.multi_reduction <add>, %65, %cst_34 [1] : vector<8x8xf32> to vector<8xf32>
    %67 = vector.shape_cast %66 : vector<8xf32> to vector<8x1xf32>
    %68 = tpu.reciprocal %67 {approx = true} : vector<8x1xf32> -> vector<8x1xf32>
    %69 = vector.broadcast %68 : vector<8x1xf32> to vector<8x8xf32>
    %70 = arith.mulf %65, %69 : vector<8x8xf32>
    %cst_35 = arith.constant dense<0.000000e+00> : vector<8x8xf32>
    %71 = tpu.matmul %70, %58, %cst_35 {dimension_numbers = #tpu.dot_dimension_numbers<[1], [0], [0], [1], [0, 0, 1, 1], [], []>} : vector<8x8xf32>, vector<8x8xf32>, vector<8x8xf32> -> vector<8x8xf32>
    %72 = vector.extract_strided_slice %55 {offsets = [0, 8], sizes = [8, 8], strides = [1, 1]} : vector<8x96xf32> to vector<8x8xf32>
    %73 = vector.extract_strided_slice %55 {offsets = [0, 40], sizes = [8, 8], strides = [1, 1]} : vector<8x96xf32> to vector<8x8xf32>
    %74 = vector.extract_strided_slice %55 {offsets = [0, 72], sizes = [8, 8], strides = [1, 1]} : vector<8x96xf32> to vector<8x8xf32>
    %cst_36 = arith.constant dense<0.000000e+00> : vector<8x8xf32>
    %75 = tpu.matmul %72, %73, %cst_36 {dimension_numbers = #tpu.dot_dimension_numbers<[1], [1], [0], [0], [0, 0, 1, 0], [], []>} : vector<8x8xf32>, vector<8x8xf32>, vector<8x8xf32> -> vector<8x8xf32>
    %76 = arith.addf %75, %5 : vector<8x8xf32>
    %cst_37 = arith.constant dense<0xFF800000> : vector<8xf32>
    %77 = vector.multi_reduction <maximumf>, %76, %cst_37 [1] : vector<8x8xf32> to vector<8xf32>
    %78 = vector.shape_cast %77 : vector<8xf32> to vector<8x1xf32>
    %79 = vector.broadcast %78 : vector<8x1xf32> to vector<8x8xf32>
    %80 = arith.subf %76, %79 : vector<8x8xf32>
    %81 = math.exp %80 : vector<8x8xf32>
    %cst_38 = arith.constant dense<0.000000e+00> : vector<8xf32>
    %82 = vector.multi_reduction <add>, %81, %cst_38 [1] : vector<8x8xf32> to vector<8xf32>
    %83 = vector.shape_cast %82 : vector<8xf32> to vector<8x1xf32>
    %84 = tpu.reciprocal %83 {approx = true} : vector<8x1xf32> -> vector<8x1xf32>
    %85 = vector.broadcast %84 : vector<8x1xf32> to vector<8x8xf32>
    %86 = arith.mulf %81, %85 : vector<8x8xf32>
    %cst_39 = arith.constant dense<0.000000e+00> : vector<8x8xf32>
    %87 = tpu.matmul %86, %74, %cst_39 {dimension_numbers = #tpu.dot_dimension_numbers<[1], [0], [0], [1], [0, 0, 1, 1], [], []>} : vector<8x8xf32>, vector<8x8xf32>, vector<8x8xf32> -> vector<8x8xf32>
    %88 = vector.extract_strided_slice %55 {offsets = [0, 16], sizes = [8, 8], strides = [1, 1]} : vector<8x96xf32> to vector<8x8xf32>
    %89 = vector.extract_strided_slice %55 {offsets = [0, 48], sizes = [8, 8], strides = [1, 1]} : vector<8x96xf32> to vector<8x8xf32>
    %90 = vector.extract_strided_slice %55 {offsets = [0, 80], sizes = [8, 8], strides = [1, 1]} : vector<8x96xf32> to vector<8x8xf32>
    %cst_40 = arith.constant dense<0.000000e+00> : vector<8x8xf32>
    %91 = tpu.matmul %88, %89, %cst_40 {dimension_numbers = #tpu.dot_dimension_numbers<[1], [1], [0], [0], [0, 0, 1, 0], [], []>} : vector<8x8xf32>, vector<8x8xf32>, vector<8x8xf32> -> vector<8x8xf32>
    %92 = arith.addf %91, %5 : vector<8x8xf32>
    %cst_41 = arith.constant dense<0xFF800000> : vector<8xf32>
    %93 = vector.multi_reduction <maximumf>, %92, %cst_41 [1] : vector<8x8xf32> to vector<8xf32>
    %94 = vector.shape_cast %93 : vector<8xf32> to vector<8x1xf32>
    %95 = vector.broadcast %94 : vector<8x1xf32> to vector<8x8xf32>
    %96 = arith.subf %92, %95 : vector<8x8xf32>
    %97 = math.exp %96 : vector<8x8xf32>
    %cst_42 = arith.constant dense<0.000000e+00> : vector<8xf32>
    %98 = vector.multi_reduction <add>, %97, %cst_42 [1] : vector<8x8xf32> to vector<8xf32>
    %99 = vector.shape_cast %98 : vector<8xf32> to vector<8x1xf32>
    %100 = tpu.reciprocal %99 {approx = true} : vector<8x1xf32> -> vector<8x1xf32>
    %101 = vector.broadcast %100 : vector<8x1xf32> to vector<8x8xf32>
    %102 = arith.mulf %97, %101 : vector<8x8xf32>
    %cst_43 = arith.constant dense<0.000000e+00> : vector<8x8xf32>
    %103 = tpu.matmul %102, %90, %cst_43 {dimension_numbers = #tpu.dot_dimension_numbers<[1], [0], [0], [1], [0, 0, 1, 1], [], []>} : vector<8x8xf32>, vector<8x8xf32>, vector<8x8xf32> -> vector<8x8xf32>
    %104 = vector.extract_strided_slice %55 {offsets = [0, 24], sizes = [8, 8], strides = [1, 1]} : vector<8x96xf32> to vector<8x8xf32>
    %105 = vector.extract_strided_slice %55 {offsets = [0, 56], sizes = [8, 8], strides = [1, 1]} : vector<8x96xf32> to vector<8x8xf32>
    %106 = vector.extract_strided_slice %55 {offsets = [0, 88], sizes = [8, 8], strides = [1, 1]} : vector<8x96xf32> to vector<8x8xf32>
    %cst_44 = arith.constant dense<0.000000e+00> : vector<8x8xf32>
    %107 = tpu.matmul %104, %105, %cst_44 {dimension_numbers = #tpu.dot_dimension_numbers<[1], [1], [0], [0], [0, 0, 1, 0], [], []>} : vector<8x8xf32>, vector<8x8xf32>, vector<8x8xf32> -> vector<8x8xf32>
    %108 = arith.addf %107, %5 : vector<8x8xf32>
    %cst_45 = arith.constant dense<0xFF800000> : vector<8xf32>
    %109 = vector.multi_reduction <maximumf>, %108, %cst_45 [1] : vector<8x8xf32> to vector<8xf32>
    %110 = vector.shape_cast %109 : vector<8xf32> to vector<8x1xf32>
    %111 = vector.broadcast %110 : vector<8x1xf32> to vector<8x8xf32>
    %112 = arith.subf %108, %111 : vector<8x8xf32>
    %113 = math.exp %112 : vector<8x8xf32>
    %cst_46 = arith.constant dense<0.000000e+00> : vector<8xf32>
    %114 = vector.multi_reduction <add>, %113, %cst_46 [1] : vector<8x8xf32> to vector<8xf32>
    %115 = vector.shape_cast %114 : vector<8xf32> to vector<8x1xf32>
    %116 = tpu.reciprocal %115 {approx = true} : vector<8x1xf32> -> vector<8x1xf32>
    %117 = vector.broadcast %116 : vector<8x1xf32> to vector<8x8xf32>
    %118 = arith.mulf %113, %117 : vector<8x8xf32>
    %cst_47 = arith.constant dense<0.000000e+00> : vector<8x8xf32>
    %119 = tpu.matmul %118, %106, %cst_47 {dimension_numbers = #tpu.dot_dimension_numbers<[1], [0], [0], [1], [0, 0, 1, 1], [], []>} : vector<8x8xf32>, vector<8x8xf32>, vector<8x8xf32> -> vector<8x8xf32>
    %120 = tpu.concatenate %71, %87, %103, %119 in 1 : vector<8x8xf32>, vector<8x8xf32>, vector<8x8xf32>, vector<8x8xf32> -> vector<8x32xf32>
    %cst_48 = arith.constant dense<0.000000e+00> : vector<8x32xf32>
    %121 = tpu.matmul %120, %28, %cst_48 {dimension_numbers = #tpu.dot_dimension_numbers<[1], [0], [0], [1], [0, 0, 1, 1], [], []>} : vector<8x32xf32>, vector<32x32xf32>, vector<8x32xf32> -> vector<8x32xf32>
    %122 = vector.broadcast %20 : vector<1x32xf32> to vector<8x32xf32>
    %123 = arith.addf %121, %122 : vector<8x32xf32>
    %124 = arith.addf %16, %123 : vector<8x32xf32>
    %cst_49 = arith.constant dense<0.000000e+00> : vector<8xf32>
    %125 = vector.multi_reduction <add>, %124, %cst_49 [1] : vector<8x32xf32> to vector<8xf32>
    %126 = vector.shape_cast %125 : vector<8xf32> to vector<8x1xf32>
    %cst_50 = arith.constant 3.200000e+01 : f32
    %127 = vector.broadcast %cst_50 : f32 to vector<8x1xf32>
    %128 = arith.divf %126, %127 : vector<8x1xf32>
    %129 = vector.broadcast %128 : vector<8x1xf32> to vector<8x32xf32>
    %130 = arith.subf %124, %129 : vector<8x32xf32>
    %131 = arith.mulf %130, %130 : vector<8x32xf32>
    %cst_51 = arith.constant dense<0.000000e+00> : vector<8xf32>
    %132 = vector.multi_reduction <add>, %131, %cst_51 [1] : vector<8x32xf32> to vector<8xf32>
    %133 = vector.shape_cast %132 : vector<8xf32> to vector<8x1xf32>
    %cst_52 = arith.constant 3.200000e+01 : f32
    %134 = vector.broadcast %cst_52 : f32 to vector<8x1xf32>
    %135 = arith.divf %133, %134 : vector<8x1xf32>
    %cst_53 = arith.constant 9.99999974E-6 : f32
    %136 = vector.broadcast %cst_53 : f32 to vector<8x1xf32>
    %137 = arith.addf %135, %136 : vector<8x1xf32>
    %138 = math.rsqrt %137 : vector<8x1xf32>
    %139 = vector.broadcast %138 : vector<8x1xf32> to vector<8x32xf32>
    %140 = arith.mulf %130, %139 : vector<8x32xf32>
    %141 = vector.broadcast %21 : vector<1x32xf32> to vector<8x32xf32>
    %142 = arith.mulf %140, %141 : vector<8x32xf32>
    %143 = vector.broadcast %22 : vector<1x32xf32> to vector<8x32xf32>
    %144 = arith.addf %142, %143 : vector<8x32xf32>
    %cst_54 = arith.constant dense<0.000000e+00> : vector<8x128xf32>
    %145 = tpu.matmul %144, %30, %cst_54 {dimension_numbers = #tpu.dot_dimension_numbers<[1], [0], [0], [1], [0, 0, 1, 1], [], []>} : vector<8x32xf32>, vector<32x128xf32>, vector<8x128xf32> -> vector<8x128xf32>
    %146 = vector.broadcast %23 : vector<1x128xf32> to vector<8x128xf32>
    %147 = arith.addf %145, %146 : vector<8x128xf32>
    %148 = arith.mulf %147, %147 : vector<8x128xf32>
    %149 = arith.mulf %147, %148 : vector<8x128xf32>
    %cst_55 = arith.constant 4.471500e-02 : f32
    %150 = vector.broadcast %cst_55 : f32 to vector<8x128xf32>
    %151 = arith.mulf %150, %149 : vector<8x128xf32>
    %152 = arith.addf %147, %151 : vector<8x128xf32>
    %cst_56 = arith.constant 0.797884583 : f32
    %153 = vector.broadcast %cst_56 : f32 to vector<8x128xf32>
    %154 = arith.mulf %153, %152 : vector<8x128xf32>
    %155 = math.tanh %154 : vector<8x128xf32>
    %cst_57 = arith.constant 1.000000e+00 : f32
    %156 = vector.broadcast %cst_57 : f32 to vector<8x128xf32>
    %157 = arith.addf %156, %155 : vector<8x128xf32>
    %cst_58 = arith.constant 5.000000e-01 : f32
    %158 = vector.broadcast %cst_58 : f32 to vector<8x128xf32>
    %159 = arith.mulf %158, %157 : vector<8x128xf32>
    %160 = arith.mulf %147, %159 : vector<8x128xf32>
    %cst_59 = arith.constant dense<0.000000e+00> : vector<8x32xf32>
    %161 = tpu.matmul %160, %32, %cst_59 {dimension_numbers = #tpu.dot_dimension_numbers<[1], [0], [0], [1], [0, 0, 1, 1], [], []>} : vector<8x128xf32>, vector<128x32xf32>, vector<8x32xf32> -> vector<8x32xf32>
    %162 = vector.broadcast %24 : vector<1x32xf32> to vector<8x32xf32>
    %163 = arith.addf %161, %162 : vector<8x32xf32>
    %164 = arith.addf %124, %163 : vector<8x32xf32>
    %c2_60 = arith.constant 2 : index
    %c0_61 = arith.constant 0 : index
    %c0_62 = arith.constant 0 : index
    %165 = vector.load %arg5[%c2_60, %c0_61, %c0_62] : memref<4x32x128xf32, #tpu.memory_space<vmem>>, vector<1x32x128xf32>
    %166 = vector.shape_cast %165 : vector<1x32x128xf32> to vector<32x128xf32>
    %c2_63 = arith.constant 2 : index
    %c0_64 = arith.constant 0 : index
    %c0_65 = arith.constant 0 : index
    %167 = vector.load %arg6[%c2_63, %c0_64, %c0_65] : memref<4x128x32xf32, #tpu.memory_space<vmem>>, vector<1x128x32xf32>
    %168 = vector.shape_cast %167 : vector<1x128x32xf32> to vector<128x32xf32>
    %c19 = arith.constant 19 : index
    %c0_66 = arith.constant 0 : index
    %169 = vector.load %arg3[%c19, %c0_66] : memref<24x128xf32, #tpu.memory_space<vmem>>, vector<1x128xf32>
    %c20 = arith.constant 20 : index
    %c0_67 = arith.constant 0 : index
    %170 = vector.load %arg3[%c20, %c0_67] : memref<24x128xf32, #tpu.memory_space<vmem>>, vector<1x32xf32>
    %cst_68 = arith.constant dense<0.000000e+00> : vector<8x128xf32>
    %171 = tpu.matmul %164, %166, %cst_68 {dimension_numbers = #tpu.dot_dimension_numbers<[1], [0], [0], [1], [0, 0, 1, 1], [], []>} : vector<8x32xf32>, vector<32x128xf32>, vector<8x128xf32> -> vector<8x128xf32>
    %172 = vector.broadcast %169 : vector<1x128xf32> to vector<8x128xf32>
    %173 = arith.addf %171, %172 : vector<8x128xf32>
    %cst_69 = arith.constant 0.000000e+00 : f32
    %174 = vector.broadcast %cst_69 : f32 to vector<8x128xf32>
    %175 = arith.maximumf %173, %174 : vector<8x128xf32>
    %cst_70 = arith.constant dense<0.000000e+00> : vector<8x32xf32>
    %176 = tpu.matmul %175, %168, %cst_70 {dimension_numbers = #tpu.dot_dimension_numbers<[1], [0], [0], [1], [0, 0, 1, 1], [], []>} : vector<8x128xf32>, vector<128x32xf32>, vector<8x32xf32> -> vector<8x32xf32>
    %177 = vector.broadcast %170 : vector<1x32xf32> to vector<8x32xf32>
    %178 = arith.addf %176, %177 : vector<8x32xf32>
    %c0_71 = arith.constant 0 : index
    %c0_72 = arith.constant 0 : index
    %179 = vector.load %arg8[%c0_71, %c0_72] : memref<8x128xf32, #tpu.memory_space<vmem>>, vector<8x128xf32>
    tpu.vector_store %arg8[%c0_71, %c0_72], %175 {strides = array<i32>} : memref<8x128xf32, #tpu.memory_space<vmem>>, vector<8x128xf32>,
    %180 = arith.subf %178, %164 : vector<8x32xf32>
    %181 = arith.mulf %180, %180 : vector<8x32xf32>
    %182 = vector.shape_cast %181 : vector<8x32xf32> to vector<1x8x32xf32>
    %cst_73 = arith.constant dense<0.000000e+00> : vector<1xf32>
    %183 = vector.multi_reduction <add>, %182, %cst_73 [1, 2] : vector<1x8x32xf32> to vector<1xf32>
    %184 = vector.shape_cast %183 : vector<1xf32> to vector<1x1x1xf32>
    %185 = vector.extract %184[0, 0, 0] : f32 from vector<1x1x1xf32>
    %186 = vector.broadcast %185 : f32 to vector<1x1xf32>
    %cst_74 = arith.constant 0.001953125 : f32
    %187 = vector.broadcast %cst_74 : f32 to vector<1x1xf32>
    %188 = arith.mulf %187, %186 : vector<1x1xf32>
    %189 = math.absf %175 : vector<8x128xf32>
    %190 = vector.shape_cast %189 : vector<8x128xf32> to vector<1x8x128xf32>
    %cst_75 = arith.constant dense<0.000000e+00> : vector<1xf32>
    %191 = vector.multi_reduction <add>, %190, %cst_75 [1, 2] : vector<1x8x128xf32> to vector<1xf32>
    %192 = vector.shape_cast %191 : vector<1xf32> to vector<1x1x1xf32>
    %193 = vector.extract %192[0, 0, 0] : f32 from vector<1x1x1xf32>
    %194 = vector.broadcast %193 : f32 to vector<1x1xf32>
    %cst_76 = arith.constant 6.250000e-04 : f32
    %195 = vector.broadcast %cst_76 : f32 to vector<1x1xf32>
    %196 = arith.mulf %195, %194 : vector<1x1xf32>
    %c8 = arith.constant 8 : index
    %c0_77 = arith.constant 0 : index
    %197 = vector.load %arg3[%c8, %c0_77] : memref<24x128xf32, #tpu.memory_space<vmem>>, vector<1x32xf32>
    %c9 = arith.constant 9 : index
    %c0_78 = arith.constant 0 : index
    %198 = vector.load %arg3[%c9, %c0_78] : memref<24x128xf32, #tpu.memory_space<vmem>>, vector<1x32xf32>
    %c10 = arith.constant 10 : index
    %c0_79 = arith.constant 0 : index
    %199 = vector.load %arg3[%c10, %c0_79] : memref<24x128xf32, #tpu.memory_space<vmem>>, vector<1x96xf32>
    %c11 = arith.constant 11 : index
    %c0_80 = arith.constant 0 : index
    %200 = vector.load %arg3[%c11, %c0_80] : memref<24x128xf32, #tpu.memory_space<vmem>>, vector<1x32xf32>
    %c12 = arith.constant 12 : index
    %c0_81 = arith.constant 0 : index
    %201 = vector.load %arg3[%c12, %c0_81] : memref<24x128xf32, #tpu.memory_space<vmem>>, vector<1x32xf32>
    %c13 = arith.constant 13 : index
    %c0_82 = arith.constant 0 : index
    %202 = vector.load %arg3[%c13, %c0_82] : memref<24x128xf32, #tpu.memory_space<vmem>>, vector<1x32xf32>
    %c14 = arith.constant 14 : index
    %c0_83 = arith.constant 0 : index
    %203 = vector.load %arg3[%c14, %c0_83] : memref<24x128xf32, #tpu.memory_space<vmem>>, vector<1x128xf32>
    %c15 = arith.constant 15 : index
    %c0_84 = arith.constant 0 : index
    %204 = vector.load %arg3[%c15, %c0_84] : memref<24x128xf32, #tpu.memory_space<vmem>>, vector<1x32xf32>
    %c1_85 = arith.constant 1 : index
    %c0_86 = arith.constant 0 : index
    %c0_87 = arith.constant 0 : index
    %205 = vector.load %arg4[%c1_85, %c0_86, %c0_87] : memref<2x32x128xf32, #tpu.memory_space<vmem>>, vector<1x32x128xf32>
    %206 = vector.shape_cast %205 : vector<1x32x128xf32> to vector<32x128xf32>
    %207 = vector.extract_strided_slice %206 {offsets = [0, 0], sizes = [32, 96], strides = [1, 1]} : vector<32x128xf32> to vector<32x96xf32>
    %208 = vector.extract_strided_slice %206 {offsets = [0, 96], sizes = [32, 32], strides = [1, 1]} : vector<32x128xf32> to vector<32x32xf32>
    %c1_88 = arith.constant 1 : index
    %c0_89 = arith.constant 0 : index
    %c0_90 = arith.constant 0 : index
    %209 = vector.load %arg5[%c1_88, %c0_89, %c0_90] : memref<4x32x128xf32, #tpu.memory_space<vmem>>, vector<1x32x128xf32>
    %210 = vector.shape_cast %209 : vector<1x32x128xf32> to vector<32x128xf32>
    %c1_91 = arith.constant 1 : index
    %c0_92 = arith.constant 0 : index
    %c0_93 = arith.constant 0 : index
    %211 = vector.load %arg6[%c1_91, %c0_92, %c0_93] : memref<4x128x32xf32, #tpu.memory_space<vmem>>, vector<1x128x32xf32>
    %212 = vector.shape_cast %211 : vector<1x128x32xf32> to vector<128x32xf32>
    %cst_94 = arith.constant dense<0.000000e+00> : vector<8xf32>
    %213 = vector.multi_reduction <add>, %178, %cst_94 [1] : vector<8x32xf32> to vector<8xf32>
    %214 = vector.shape_cast %213 : vector<8xf32> to vector<8x1xf32>
    %cst_95 = arith.constant 3.200000e+01 : f32
    %215 = vector.broadcast %cst_95 : f32 to vector<8x1xf32>
    %216 = arith.divf %214, %215 : vector<8x1xf32>
    %217 = vector.broadcast %216 : vector<8x1xf32> to vector<8x32xf32>
    %218 = arith.subf %178, %217 : vector<8x32xf32>
    %219 = arith.mulf %218, %218 : vector<8x32xf32>
    %cst_96 = arith.constant dense<0.000000e+00> : vector<8xf32>
    %220 = vector.multi_reduction <add>, %219, %cst_96 [1] : vector<8x32xf32> to vector<8xf32>
    %221 = vector.shape_cast %220 : vector<8xf32> to vector<8x1xf32>
    %cst_97 = arith.constant 3.200000e+01 : f32
    %222 = vector.broadcast %cst_97 : f32 to vector<8x1xf32>
    %223 = arith.divf %221, %222 : vector<8x1xf32>
    %cst_98 = arith.constant 9.99999974E-6 : f32
    %224 = vector.broadcast %cst_98 : f32 to vector<8x1xf32>
    %225 = arith.addf %223, %224 : vector<8x1xf32>
    %226 = math.rsqrt %225 : vector<8x1xf32>
    %227 = vector.broadcast %226 : vector<8x1xf32> to vector<8x32xf32>
    %228 = arith.mulf %218, %227 : vector<8x32xf32>
    %229 = vector.broadcast %197 : vector<1x32xf32> to vector<8x32xf32>
    %230 = arith.mulf %228, %229 : vector<8x32xf32>
    %231 = vector.broadcast %198 : vector<1x32xf32> to vector<8x32xf32>
    %232 = arith.addf %230, %231 : vector<8x32xf32>
    %cst_99 = arith.constant dense<0.000000e+00> : vector<8x96xf32>
    %233 = tpu.matmul %232, %207, %cst_99 {dimension_numbers = #tpu.dot_dimension_numbers<[1], [0], [0], [1], [0, 0, 1, 1], [], []>} : vector<8x32xf32>, vector<32x96xf32>, vector<8x96xf32> -> vector<8x96xf32>
    %234 = vector.broadcast %199 : vector<1x96xf32> to vector<8x96xf32>
    %235 = arith.addf %233, %234 : vector<8x96xf32>
    %236 = vector.extract_strided_slice %235 {offsets = [0, 0], sizes = [8, 8], strides = [1, 1]} : vector<8x96xf32> to vector<8x8xf32>
    %237 = vector.extract_strided_slice %235 {offsets = [0, 32], sizes = [8, 8], strides = [1, 1]} : vector<8x96xf32> to vector<8x8xf32>
    %238 = vector.extract_strided_slice %235 {offsets = [0, 64], sizes = [8, 8], strides = [1, 1]} : vector<8x96xf32> to vector<8x8xf32>
    %cst_100 = arith.constant dense<0.000000e+00> : vector<8x8xf32>
    %239 = tpu.matmul %236, %237, %cst_100 {dimension_numbers = #tpu.dot_dimension_numbers<[1], [1], [0], [0], [0, 0, 1, 0], [], []>} : vector<8x8xf32>, vector<8x8xf32>, vector<8x8xf32> -> vector<8x8xf32>
    %240 = arith.addf %239, %5 : vector<8x8xf32>
    %cst_101 = arith.constant dense<0xFF800000> : vector<8xf32>
    %241 = vector.multi_reduction <maximumf>, %240, %cst_101 [1] : vector<8x8xf32> to vector<8xf32>
    %242 = vector.shape_cast %241 : vector<8xf32> to vector<8x1xf32>
    %243 = vector.broadcast %242 : vector<8x1xf32> to vector<8x8xf32>
    %244 = arith.subf %240, %243 : vector<8x8xf32>
    %245 = math.exp %244 : vector<8x8xf32>
    %cst_102 = arith.constant dense<0.000000e+00> : vector<8xf32>
    %246 = vector.multi_reduction <add>, %245, %cst_102 [1] : vector<8x8xf32> to vector<8xf32>
    %247 = vector.shape_cast %246 : vector<8xf32> to vector<8x1xf32>
    %248 = tpu.reciprocal %247 {approx = true} : vector<8x1xf32> -> vector<8x1xf32>
    %249 = vector.broadcast %248 : vector<8x1xf32> to vector<8x8xf32>
    %250 = arith.mulf %245, %249 : vector<8x8xf32>
    %cst_103 = arith.constant dense<0.000000e+00> : vector<8x8xf32>
    %251 = tpu.matmul %250, %238, %cst_103 {dimension_numbers = #tpu.dot_dimension_numbers<[1], [0], [0], [1], [0, 0, 1, 1], [], []>} : vector<8x8xf32>, vector<8x8xf32>, vector<8x8xf32> -> vector<8x8xf32>
    %252 = vector.extract_strided_slice %235 {offsets = [0, 8], sizes = [8, 8], strides = [1, 1]} : vector<8x96xf32> to vector<8x8xf32>
    %253 = vector.extract_strided_slice %235 {offsets = [0, 40], sizes = [8, 8], strides = [1, 1]} : vector<8x96xf32> to vector<8x8xf32>
    %254 = vector.extract_strided_slice %235 {offsets = [0, 72], sizes = [8, 8], strides = [1, 1]} : vector<8x96xf32> to vector<8x8xf32>
    %cst_104 = arith.constant dense<0.000000e+00> : vector<8x8xf32>
    %255 = tpu.matmul %252, %253, %cst_104 {dimension_numbers = #tpu.dot_dimension_numbers<[1], [1], [0], [0], [0, 0, 1, 0], [], []>} : vector<8x8xf32>, vector<8x8xf32>, vector<8x8xf32> -> vector<8x8xf32>
    %256 = arith.addf %255, %5 : vector<8x8xf32>
    %cst_105 = arith.constant dense<0xFF800000> : vector<8xf32>
    %257 = vector.multi_reduction <maximumf>, %256, %cst_105 [1] : vector<8x8xf32> to vector<8xf32>
    %258 = vector.shape_cast %257 : vector<8xf32> to vector<8x1xf32>
    %259 = vector.broadcast %258 : vector<8x1xf32> to vector<8x8xf32>
    %260 = arith.subf %256, %259 : vector<8x8xf32>
    %261 = math.exp %260 : vector<8x8xf32>
    %cst_106 = arith.constant dense<0.000000e+00> : vector<8xf32>
    %262 = vector.multi_reduction <add>, %261, %cst_106 [1] : vector<8x8xf32> to vector<8xf32>
    %263 = vector.shape_cast %262 : vector<8xf32> to vector<8x1xf32>
    %264 = tpu.reciprocal %263 {approx = true} : vector<8x1xf32> -> vector<8x1xf32>
    %265 = vector.broadcast %264 : vector<8x1xf32> to vector<8x8xf32>
    %266 = arith.mulf %261, %265 : vector<8x8xf32>
    %cst_107 = arith.constant dense<0.000000e+00> : vector<8x8xf32>
    %267 = tpu.matmul %266, %254, %cst_107 {dimension_numbers = #tpu.dot_dimension_numbers<[1], [0], [0], [1], [0, 0, 1, 1], [], []>} : vector<8x8xf32>, vector<8x8xf32>, vector<8x8xf32> -> vector<8x8xf32>
    %268 = vector.extract_strided_slice %235 {offsets = [0, 16], sizes = [8, 8], strides = [1, 1]} : vector<8x96xf32> to vector<8x8xf32>
    %269 = vector.extract_strided_slice %235 {offsets = [0, 48], sizes = [8, 8], strides = [1, 1]} : vector<8x96xf32> to vector<8x8xf32>
    %270 = vector.extract_strided_slice %235 {offsets = [0, 80], sizes = [8, 8], strides = [1, 1]} : vector<8x96xf32> to vector<8x8xf32>
    %cst_108 = arith.constant dense<0.000000e+00> : vector<8x8xf32>
    %271 = tpu.matmul %268, %269, %cst_108 {dimension_numbers = #tpu.dot_dimension_numbers<[1], [1], [0], [0], [0, 0, 1, 0], [], []>} : vector<8x8xf32>, vector<8x8xf32>, vector<8x8xf32> -> vector<8x8xf32>
    %272 = arith.addf %271, %5 : vector<8x8xf32>
    %cst_109 = arith.constant dense<0xFF800000> : vector<8xf32>
    %273 = vector.multi_reduction <maximumf>, %272, %cst_109 [1] : vector<8x8xf32> to vector<8xf32>
    %274 = vector.shape_cast %273 : vector<8xf32> to vector<8x1xf32>
    %275 = vector.broadcast %274 : vector<8x1xf32> to vector<8x8xf32>
    %276 = arith.subf %272, %275 : vector<8x8xf32>
    %277 = math.exp %276 : vector<8x8xf32>
    %cst_110 = arith.constant dense<0.000000e+00> : vector<8xf32>
    %278 = vector.multi_reduction <add>, %277, %cst_110 [1] : vector<8x8xf32> to vector<8xf32>
    %279 = vector.shape_cast %278 : vector<8xf32> to vector<8x1xf32>
    %280 = tpu.reciprocal %279 {approx = true} : vector<8x1xf32> -> vector<8x1xf32>
    %281 = vector.broadcast %280 : vector<8x1xf32> to vector<8x8xf32>
    %282 = arith.mulf %277, %281 : vector<8x8xf32>
    %cst_111 = arith.constant dense<0.000000e+00> : vector<8x8xf32>
    %283 = tpu.matmul %282, %270, %cst_111 {dimension_numbers = #tpu.dot_dimension_numbers<[1], [0], [0], [1], [0, 0, 1, 1], [], []>} : vector<8x8xf32>, vector<8x8xf32>, vector<8x8xf32> -> vector<8x8xf32>
    %284 = vector.extract_strided_slice %235 {offsets = [0, 24], sizes = [8, 8], strides = [1, 1]} : vector<8x96xf32> to vector<8x8xf32>
    %285 = vector.extract_strided_slice %235 {offsets = [0, 56], sizes = [8, 8], strides = [1, 1]} : vector<8x96xf32> to vector<8x8xf32>
    %286 = vector.extract_strided_slice %235 {offsets = [0, 88], sizes = [8, 8], strides = [1, 1]} : vector<8x96xf32> to vector<8x8xf32>
    %cst_112 = arith.constant dense<0.000000e+00> : vector<8x8xf32>
    %287 = tpu.matmul %284, %285, %cst_112 {dimension_numbers = #tpu.dot_dimension_numbers<[1], [1], [0], [0], [0, 0, 1, 0], [], []>} : vector<8x8xf32>, vector<8x8xf32>, vector<8x8xf32> -> vector<8x8xf32>
    %288 = arith.addf %287, %5 : vector<8x8xf32>
    %cst_113 = arith.constant dense<0xFF800000> : vector<8xf32>
    %289 = vector.multi_reduction <maximumf>, %288, %cst_113 [1] : vector<8x8xf32> to vector<8xf32>
    %290 = vector.shape_cast %289 : vector<8xf32> to vector<8x1xf32>
    %291 = vector.broadcast %290 : vector<8x1xf32> to vector<8x8xf32>
    %292 = arith.subf %288, %291 : vector<8x8xf32>
    %293 = math.exp %292 : vector<8x8xf32>
    %cst_114 = arith.constant dense<0.000000e+00> : vector<8xf32>
    %294 = vector.multi_reduction <add>, %293, %cst_114 [1] : vector<8x8xf32> to vector<8xf32>
    %295 = vector.shape_cast %294 : vector<8xf32> to vector<8x1xf32>
    %296 = tpu.reciprocal %295 {approx = true} : vector<8x1xf32> -> vector<8x1xf32>
    %297 = vector.broadcast %296 : vector<8x1xf32> to vector<8x8xf32>
    %298 = arith.mulf %293, %297 : vector<8x8xf32>
    %cst_115 = arith.constant dense<0.000000e+00> : vector<8x8xf32>
    %299 = tpu.matmul %298, %286, %cst_115 {dimension_numbers = #tpu.dot_dimension_numbers<[1], [0], [0], [1], [0, 0, 1, 1], [], []>} : vector<8x8xf32>, vector<8x8xf32>, vector<8x8xf32> -> vector<8x8xf32>
    %300 = tpu.concatenate %251, %267, %283, %299 in 1 : vector<8x8xf32>, vector<8x8xf32>, vector<8x8xf32>, vector<8x8xf32> -> vector<8x32xf32>
    %cst_116 = arith.constant dense<0.000000e+00> : vector<8x32xf32>
    %301 = tpu.matmul %300, %208, %cst_116 {dimension_numbers = #tpu.dot_dimension_numbers<[1], [0], [0], [1], [0, 0, 1, 1], [], []>} : vector<8x32xf32>, vector<32x32xf32>, vector<8x32xf32> -> vector<8x32xf32>
    %302 = vector.broadcast %200 : vector<1x32xf32> to vector<8x32xf32>
    %303 = arith.addf %301, %302 : vector<8x32xf32>
    %304 = arith.addf %178, %303 : vector<8x32xf32>
    %cst_117 = arith.constant dense<0.000000e+00> : vector<8xf32>
    %305 = vector.multi_reduction <add>, %304, %cst_117 [1] : vector<8x32xf32> to vector<8xf32>
    %306 = vector.shape_cast %305 : vector<8xf32> to vector<8x1xf32>
    %cst_118 = arith.constant 3.200000e+01 : f32
    %307 = vector.broadcast %cst_118 : f32 to vector<8x1xf32>
    %308 = arith.divf %306, %307 : vector<8x1xf32>
    %309 = vector.broadcast %308 : vector<8x1xf32> to vector<8x32xf32>
    %310 = arith.subf %304, %309 : vector<8x32xf32>
    %311 = arith.mulf %310, %310 : vector<8x32xf32>
    %cst_119 = arith.constant dense<0.000000e+00> : vector<8xf32>
    %312 = vector.multi_reduction <add>, %311, %cst_119 [1] : vector<8x32xf32> to vector<8xf32>
    %313 = vector.shape_cast %312 : vector<8xf32> to vector<8x1xf32>
    %cst_120 = arith.constant 3.200000e+01 : f32
    %314 = vector.broadcast %cst_120 : f32 to vector<8x1xf32>
    %315 = arith.divf %313, %314 : vector<8x1xf32>
    %cst_121 = arith.constant 9.99999974E-6 : f32
    %316 = vector.broadcast %cst_121 : f32 to vector<8x1xf32>
    %317 = arith.addf %315, %316 : vector<8x1xf32>
    %318 = math.rsqrt %317 : vector<8x1xf32>
    %319 = vector.broadcast %318 : vector<8x1xf32> to vector<8x32xf32>
    %320 = arith.mulf %310, %319 : vector<8x32xf32>
    %321 = vector.broadcast %201 : vector<1x32xf32> to vector<8x32xf32>
    %322 = arith.mulf %320, %321 : vector<8x32xf32>
    %323 = vector.broadcast %202 : vector<1x32xf32> to vector<8x32xf32>
    %324 = arith.addf %322, %323 : vector<8x32xf32>
    %cst_122 = arith.constant dense<0.000000e+00> : vector<8x128xf32>
    %325 = tpu.matmul %324, %210, %cst_122 {dimension_numbers = #tpu.dot_dimension_numbers<[1], [0], [0], [1], [0, 0, 1, 1], [], []>} : vector<8x32xf32>, vector<32x128xf32>, vector<8x128xf32> -> vector<8x128xf32>
    %326 = vector.broadcast %203 : vector<1x128xf32> to vector<8x128xf32>
    %327 = arith.addf %325, %326 : vector<8x128xf32>
    %328 = arith.mulf %327, %327 : vector<8x128xf32>
    %329 = arith.mulf %327, %328 : vector<8x128xf32>
    %cst_123 = arith.constant 4.471500e-02 : f32
    %330 = vector.broadcast %cst_123 : f32 to vector<8x128xf32>
    %331 = arith.mulf %330, %329 : vector<8x128xf32>
    %332 = arith.addf %327, %331 : vector<8x128xf32>
    %cst_124 = arith.constant 0.797884583 : f32
    %333 = vector.broadcast %cst_124 : f32 to vector<8x128xf32>
    %334 = arith.mulf %333, %332 : vector<8x128xf32>
    %335 = math.tanh %334 : vector<8x128xf32>
    %cst_125 = arith.constant 1.000000e+00 : f32
    %336 = vector.broadcast %cst_125 : f32 to vector<8x128xf32>
    %337 = arith.addf %336, %335 : vector<8x128xf32>
    %cst_126 = arith.constant 5.000000e-01 : f32
    %338 = vector.broadcast %cst_126 : f32 to vector<8x128xf32>
    %339 = arith.mulf %338, %337 : vector<8x128xf32>
    %340 = arith.mulf %327, %339 : vector<8x128xf32>
    %cst_127 = arith.constant dense<0.000000e+00> : vector<8x32xf32>
    %341 = tpu.matmul %340, %212, %cst_127 {dimension_numbers = #tpu.dot_dimension_numbers<[1], [0], [0], [1], [0, 0, 1, 1], [], []>} : vector<8x128xf32>, vector<128x32xf32>, vector<8x32xf32> -> vector<8x32xf32>
    %342 = vector.broadcast %204 : vector<1x32xf32> to vector<8x32xf32>
    %343 = arith.addf %341, %342 : vector<8x32xf32>
    %344 = arith.addf %304, %343 : vector<8x32xf32>
    %c16 = arith.constant 16 : index
    %c0_128 = arith.constant 0 : index
    %345 = vector.load %arg3[%c16, %c0_128] : memref<24x128xf32, #tpu.memory_space<vmem>>, vector<1x32xf32>
    %c17 = arith.constant 17 : index
    %c0_129 = arith.constant 0 : index
    %346 = vector.load %arg3[%c17, %c0_129] : memref<24x128xf32, #tpu.memory_space<vmem>>, vector<1x32xf32>
    %cst_130 = arith.constant dense<0.000000e+00> : vector<8xf32>
    %347 = vector.multi_reduction <add>, %344, %cst_130 [1] : vector<8x32xf32> to vector<8xf32>
    %348 = vector.shape_cast %347 : vector<8xf32> to vector<8x1xf32>
    %cst_131 = arith.constant 3.200000e+01 : f32
    %349 = vector.broadcast %cst_131 : f32 to vector<8x1xf32>
    %350 = arith.divf %348, %349 : vector<8x1xf32>
    %351 = vector.broadcast %350 : vector<8x1xf32> to vector<8x32xf32>
    %352 = arith.subf %344, %351 : vector<8x32xf32>
    %353 = arith.mulf %352, %352 : vector<8x32xf32>
    %cst_132 = arith.constant dense<0.000000e+00> : vector<8xf32>
    %354 = vector.multi_reduction <add>, %353, %cst_132 [1] : vector<8x32xf32> to vector<8xf32>
    %355 = vector.shape_cast %354 : vector<8xf32> to vector<8x1xf32>
    %cst_133 = arith.constant 3.200000e+01 : f32
    %356 = vector.broadcast %cst_133 : f32 to vector<8x1xf32>
    %357 = arith.divf %355, %356 : vector<8x1xf32>
    %cst_134 = arith.constant 9.99999974E-6 : f32
    %358 = vector.broadcast %cst_134 : f32 to vector<8x1xf32>
    %359 = arith.addf %357, %358 : vector<8x1xf32>
    %360 = math.rsqrt %359 : vector<8x1xf32>
    %361 = vector.broadcast %360 : vector<8x1xf32> to vector<8x32xf32>
    %362 = arith.mulf %352, %361 : vector<8x32xf32>
    %363 = vector.broadcast %345 : vector<1x32xf32> to vector<8x32xf32>
    %364 = arith.mulf %362, %363 : vector<8x32xf32>
    %365 = vector.broadcast %346 : vector<1x32xf32> to vector<8x32xf32>
    %366 = arith.addf %364, %365 : vector<8x32xf32>
    %c3_135 = arith.constant 3 : index
    %c0_136 = arith.constant 0 : index
    %c0_137 = arith.constant 0 : index
    %367 = vector.load %arg5[%c3_135, %c0_136, %c0_137] : memref<4x32x128xf32, #tpu.memory_space<vmem>>, vector<1x32x128xf32>
    %368 = vector.shape_cast %367 : vector<1x32x128xf32> to vector<32x128xf32>
    %cst_138 = arith.constant dense<0.000000e+00> : vector<8x128xf32>
    %369 = tpu.matmul %366, %368, %cst_138 {dimension_numbers = #tpu.dot_dimension_numbers<[1], [0], [0], [1], [0, 0, 1, 1], [], []>} : vector<8x32xf32>, vector<32x128xf32>, vector<8x128xf32> -> vector<8x128xf32>
    %c18 = arith.constant 18 : index
    %c0_139 = arith.constant 0 : index
    %370 = vector.load %arg3[%c18, %c0_139] : memref<24x128xf32, #tpu.memory_space<vmem>>, vector<1x128xf32>
    %371 = vector.broadcast %370 : vector<1x128xf32> to vector<8x128xf32>
    %372 = arith.addf %369, %371 : vector<8x128xf32>
    %c0_140 = arith.constant 0 : index
    %c0_141 = arith.constant 0 : index
    %373 = vector.load %arg9[%c0_140, %c0_141] : memref<8x128xf32, #tpu.memory_space<vmem>>, vector<8x128xf32>
    tpu.vector_store %arg9[%c0_140, %c0_141], %372 {strides = array<i32>} : memref<8x128xf32, #tpu.memory_space<vmem>>, vector<8x128xf32>,
    %374 = vector.shape_cast %188 : vector<1x1xf32> to vector<1x1xf32>
    %375 = vector.broadcast %374 : vector<1x1xf32> to vector<8x16xf32>
    %376 = vector.shape_cast %196 : vector<1x1xf32> to vector<1x1xf32>
    %377 = vector.broadcast %376 : vector<1x1xf32> to vector<8x16xf32>
    %378 = tpu.concatenate %164, %178, %344, %375, %377 in 1 : vector<8x32xf32>, vector<8x32xf32>, vector<8x32xf32>, vector<8x16xf32>, vector<8x16xf32> -> vector<8x128xf32>
    %c0_142 = arith.constant 0 : index
    %c0_143 = arith.constant 0 : index
    %379 = vector.load %arg7[%c0_142, %c0_143] : memref<8x128xf32, #tpu.memory_space<vmem>>, vector<8x128xf32>
    tpu.vector_store %arg7[%c0_142, %c0_143], %378 {strides = array<i32>} : memref<8x128xf32, #tpu.memory_space<vmem>>, vector<8x128xf32>,
    return
  }
  func.func @transform_0(%arg0: i32) -> (i32, i32) {
    %c0_i32 = arith.constant 0 : i32
    %c0_i32_0 = arith.constant 0 : i32
    return %arg0, %c0_i32 : i32, i32
  }
  func.func @transform_1(%arg0: i32) -> (i32, i32) {
    %c0_i32 = arith.constant 0 : i32
    %c0_i32_0 = arith.constant 0 : i32
    %c0_i32_1 = arith.constant 0 : i32
    return %c0_i32, %c0_i32_0 : i32, i32
  }
  func.func @transform_2(%arg0: i32) -> (i32, i32) {
    %c0_i32 = arith.constant 0 : i32
    %c0_i32_0 = arith.constant 0 : i32
    %c0_i32_1 = arith.constant 0 : i32
    return %c0_i32, %c0_i32_0 : i32, i32
  }
  func.func @transform_3(%arg0: i32) -> (i32, i32, i32) {
    %c0_i32 = arith.constant 0 : i32
    %c0_i32_0 = arith.constant 0 : i32
    %c0_i32_1 = arith.constant 0 : i32
    %c0_i32_2 = arith.constant 0 : i32
    return %c0_i32, %c0_i32_0, %c0_i32_1 : i32, i32, i32
  }
  func.func @transform_4(%arg0: i32) -> (i32, i32, i32) {
    %c0_i32 = arith.constant 0 : i32
    %c0_i32_0 = arith.constant 0 : i32
    %c0_i32_1 = arith.constant 0 : i32
    %c0_i32_2 = arith.constant 0 : i32
    return %c0_i32, %c0_i32_0, %c0_i32_1 : i32, i32, i32
  }
  func.func @transform_5(%arg0: i32) -> (i32, i32, i32) {
    %c0_i32 = arith.constant 0 : i32
    %c0_i32_0 = arith.constant 0 : i32
    %c0_i32_1 = arith.constant 0 : i32
    %c0_i32_2 = arith.constant 0 : i32
    return %c0_i32, %c0_i32_0, %c0_i32_1 : i32, i32, i32
  }
  func.func @transform_6(%arg0: i32) -> (i32, i32) {
    %c0_i32 = arith.constant 0 : i32
    %c0_i32_0 = arith.constant 0 : i32
    return %arg0, %c0_i32 : i32, i32
  }
  func.func @transform_7(%arg0: i32) -> (i32, i32) {
    %c0_i32 = arith.constant 0 : i32
    %c0_i32_0 = arith.constant 0 : i32
    return %arg0, %c0_i32 : i32, i32
  }
  func.func @transform_8(%arg0: i32) -> (i32, i32) {
    %c0_i32 = arith.constant 0 : i32
    %c0_i32_0 = arith.constant 0 : i32
    return %arg0, %c0_i32 : i32, i32
  }
}

</mosaic_0001>

<bundles_post_ra>
// kernel: tpu_custom_call.1
= control target key start
LH: loop header
LB: loop body
LE: loop exit
PB: predicated region body
PF: predicated region fallthrough
CT: control target
= control target key end

     0   :  { %14 = vsyncpa [#allocation3], 0  ;;  %s4991_s0 = inlined_call_operand.vmem [shape: s32[16,1], index: 0, kind: input, shape index: {}]   ;;  %s4992_s1 = inlined_call_operand.vmem [shape: f32[8,32], index: 1, kind: input, shape index: {}]   ;;  %s4993_s2 = inlined_call_operand.vmem [shape: f32[24,128], index: 2, kind: input, shape index: {}]   ;;  %s4994_s3 = inlined_call_operand.vmem [shape: f32[2,32,128], index: 3, kind: input, shape index: {}]   ;;  %s4995_s4 = inlined_call_operand.vmem [shape: f32[4,32,128], index: 4, kind: input, shape index: {}]   ;;  %s4996_s5 = inlined_call_operand.vmem [shape: f32[4,128,32], index: 5, kind: input, shape index: {}]   ;;  %s4997_s6 = inlined_call_operand.hbm [shape: f32[16,128], index: 6, kind: output, shape index: {0}]   ;;  %s4998_s7 = inlined_call_operand.hbm [shape: f32[16,128], index: 7, kind: output, shape index: {1}]   ;;  %s4999_s8 = inlined_call_operand.hbm [shape: f32[16,128], index: 8, kind: output, shape index: {2}]  }
   0x1   :  { %16 = vsyncpa [#allocation3 + $0x1], 0 }
   0x2   :  { %17 = vsyncpa [#allocation5], 0 }
   0x3   :  { %19 = vsyncpa [#allocation5 + $0x1], 0  ;;  %s4155_s27 = smov 0   ;;  %s4157_s28 = smov 0  }
   0x4   :  { %s4159_s29 = smov 0   ;;  %s4161_s30 = smov 0  }
   0x5 LB: > { %s4176_s9 = sadd.s32 4294967295, %s4084_s30   ;;  %s5000_s10 = sadd.s32 4294967294, %s4084_s30   ;;  %s4084_s30 = sphi %s4161_s30, %s5037_s30   ;;  %s4080_s29 = sphi %s4159_s29, %s5036_s29   ;;  %s4076_s28 = sphi %s4157_s28, %s5035_s28   ;;  %s4072_s27 = sphi %s4155_s27, %s5034_s27  }
   0x6   : > { %s4180_s11 = sadd.s32 1, %s4084_s30   ;;  %s163_s12 = sadd.s32 1, %s4080_s29 }
   0x7   : > { %s160_s13 = ssub.s32 %s4084_s30, %s4180_s11  ;;  %p173_p0 = scmp.ne.s32.totalorder %s4080_s29, %s4076_s28 }
   0x8   : > { %p161_p1 = scmp.eq.s32.totalorder %s160_s13, 0  ;;  %p174_p2 = scmp.eq.s32.totalorder %s4176_s9, 1 }
   0x9   : > { %p179_p3 = scmp.ne.s32.totalorder %s4076_s28, %s4072_s27  ;;  %p180_p4 = scmp.eq.s32.totalorder %s5000_s10, 1 }
   0xa   : > { %s4193_s14 = scalar_select %p161_p1, %s4080_s29, %s163_s12  }
   0xb   : > { %p4195_p5 = por %p174_p2, %p173_p0  ;;  %p4199_p6 = por %p180_p4, %p179_p3 }
   0xc   : > { %p3097_p7 = scmp.ge.s32.totalorder %s4084_s30, 1  ;;  %p272_p8 = scmp.lt.s32.totalorder %s4084_s30, 3 }
   0xe   : > { %p273_p9 = pnand %p3097_p7, %p272_p8 }
   0xf   : > { %p315_p10 = scmp.lt.s32.totalorder (!%p273_p9), %s4176_s9, 1  ;;  %v3103_v0 = vld [vmem:[%s4996_s5 + $0x180] sm:$0xff] (!%p273_p9)  ;;  %v3104_v1 = vld [vmem:[%s4996_s5 + $0x188] sm:$0xff] (!%p273_p9)  ;;  %v3105_v2 = vld [vmem:[%s4996_s5 + $0x190] sm:$0xff] (!%p273_p9)  ;;  %v4086_v3 = vmov (!%p273_p9), 0   ;;  %v4087_v4 = vmov (!%p273_p9), 0.0|0.0   ;;  %v319_v28 = vlaneseq (!%p273_p9) }
  0x10   : > { %276 = sbr.rel (%p273_p9) target bundleno = 7969 (0x1f21), region = 44  ;;  %3895 = vset.pattern.permute.xlu0 (!%p273_p9), %v4086_v3  ;;  %3677 = vmatprep.subr.bf16.mxu0 (!%p273_p9), %v4087_v4  ;;  %v3678_v5 = vpack.c.bf16 (!%p273_p9), %v3104_v1, %v3103_v0  ;;  %v3106_v6 = vld [vmem:[%s4996_s5 + $0x198] sm:$0xff] (!%p273_p9)  ;;  %v3107_v8 = vld [vmem:[%s4996_s5 + $0x1a0] sm:$0xff] (!%p273_p9)  ;;  %v3108_v9 = vld [vmem:[%s4996_s5 + $0x1a8] sm:$0xff] (!%p273_p9)  ;;  %vm4088_vm0 = vmmov (!%p273_p9), 0   ;;  %v4089_v14 = vmov (!%p273_p9), 0.0  }
  0x11   : > { %3701 = vmatprep.subr.bf16.mxu1 (!%p273_p9), %v4087_v4  ;;  %v3681_v7 = vpack.c.bf16 (!%p273_p9), %v3106_v6, %v3105_v2  ;;  %v3684_v11 = vpack.c.bf16 (!%p273_p9), %v3108_v9, %v3107_v8  ;;  %v3109_v12 = vld [vmem:[%s4996_s5 + $0x1b0] sm:$0xff] (!%p273_p9)  ;;  %v3110_v13 = vld [vmem:[%s4996_s5 + $0x1b8] sm:$0xff] (!%p273_p9)  ;;  %3401 = vmatprep.mubr.msk.f32.mxu0 (!%p273_p9), %vm4088_vm0, %v4089_v14  ;;  %v3111_v16 = vld [vmem:[%s4996_s5 + $0x1c0] sm:$0xff] (!%p273_p9)  ;;  %v4272_v29 = vand.u32 (!%p273_p9), 127, %v319_v28  ;;  %v4090_v31 = vmov (!%p273_p9), 1.0   ;;  %s5008_s22 = smov (!%p273_p9), 64  }
  0x12   : > { %3679 = vmatpush3.bf16.msra.mxu0 (!%p273_p9), %v3678_v5  ;;  %3412 = vmatprep.mubr.msk.f32.mxu1 (!%p273_p9), %vm4088_vm0, %v4089_v14  ;;  %v3687_v15 = vpack.c.bf16 (!%p273_p9), %v3110_v13, %v3109_v12  ;;  %v3112_v17 = vld [vmem:[%s4996_s5 + $0x1c8] sm:$0xff] (!%p273_p9)  ;;  %v3113_v19 = vld [vmem:[%s4996_s5 + $0x1d0] sm:$0xff] (!%p273_p9)  ;;  %v3114_v20 = vld [vmem:[%s4996_s5 + $0x1d8] sm:$0xff] (!%p273_p9)  ;;  %vm452_vm2 = vcmask (!%p273_p9), 261120   ;;  %s4092_s23 = smov (!%p273_p9), 96   ;;  %vm557_vm3 = vcmask (!%p273_p9), 64512  }
  0x13   : > { %3680 = vmatprep.subr.bf16.mxu0 (!%p273_p9), %v4087_v4  ;;  %v3690_v18 = vpack.c.bf16 (!%p273_p9), %v3112_v17, %v3111_v16  ;;  %v3693_v21 = vpack.c.bf16 (!%p273_p9), %v3114_v20, %v3113_v19  ;;  %v3115_v22 = vld [vmem:[%s4996_s5 + $0x1e0] sm:$0xff] (!%p273_p9)  ;;  %v3116_v23 = vld [vmem:[%s4996_s5 + $0x1e8] sm:$0xff] (!%p273_p9)  ;;  %v3117_v25 = vld [vmem:[%s4996_s5 + $0x1f0] sm:$0xff] (!%p273_p9)  ;;  %v320_v0 = vshrl.u32 (!%p273_p9), %v319_v28, 7  ;;  %v4093_v1 = vmov (!%p273_p9), -1e+30  }
  0x14   : > { %v3696_v24 = vpack.c.bf16 (!%p273_p9), %v3116_v23, %v3115_v22  ;;  %v3118_v26 = vld [vmem:[%s4996_s5 + $0x1f8] sm:$0xff] (!%p273_p9)  ;;  %v349_v32 = vld [vmem:[%s4992_s1] sm:$0xff] (!%p273_p9)  ;;  %v4294_v43 = vld [vmem:[%s4994_s3 + $0x8] sm:$0xff] (!%p273_p9)  ;;  %s4094_s24 = smov (!%p273_p9), 88   ;;  %s4097_s12 = smov (!%p273_p9), 112   ;;  %vm1227_vm5 = vcmask (!%p273_p9), 130048  }
  0x15   : > { %v3699_v27 = vpack.c.bf16 (!%p273_p9), %v3118_v26, %v3117_v25  ;;  %v4289_v42 = vld [vmem:[%s4994_s3] sm:$0xff] (!%p273_p9)  ;;  %v4299_v44 = vld [vmem:[%s4994_s3 + $0x10] sm:$0xff] (!%p273_p9)  ;;  %v4308_v47 = vld [vmem:[%s4994_s3 + $0x18] sm:$0xff] (!%p273_p9)  ;;  %vm323_vm4 = vcmp.ge.s32.totalorder (!%p273_p9), %v320_v0, %v4272_v29  ;;  %s5012_s13 = smov (!%p273_p9), 80   ;;  %s5007_s17 = smov (!%p273_p9), 48   ;;  %vm1229_vm6 = vcmask (!%p273_p9), 195584  }
  0x16   : > { %3682 = vmatpush3.bf16.msra.mxu0 (!%p273_p9), %v3681_v7  ;;  %v3896_v45 = vpack.i.bf16 (!%p273_p9), %v4294_v43, %v4289_v42  ;;  %v3702_v46 = vpack.c.bf16 (!%p273_p9), %v4294_v43, %v4289_v42  ;;  %v3705_v48 = vpack.c.bf16 (!%p273_p9), %v4308_v47, %v4299_v44  ;;  %v3120_v53 = vld [vmem:[%s4993_s2] ss:$0 sm:$0xff] (!%p273_p9)  ;;  %v3121_v55 = vld [vmem:[%s4993_s2 + $0x1] ss:$0 sm:$0xff] (!%p273_p9)  ;;  %v3122_v58 = vld [vmem:[%s4993_s2 + $0x2] ss:$0 sm:$0xff] (!%p273_p9) }
  0x17   : > { %s316_s25 = scalar_select %p315_p10, %s4176_s9, 1  ;;  %3683 = vmatprep.subr.bf16.mxu0 %v4087_v4  ;;  %v4340_v2 = vsel %vm323_vm4, 0.0, %v4093_v1  ;;  %vm2917_vm7 = vcmask 523264   ;;  %vm2919_vm8 = vcmask 785408   ;;  %vm2921_vm9 = vcmask 916480  }
  0x18   : > { %3703 = vmatpush3.bf16.msra.mxu1 %v3702_v46  ;;  %s5013_s18 = smov 104   ;;  %s5011_s19 = smov 72  }
  0x19   : > { %s3101_s26 = sshll.u32 %s316_s25, 3  ;;  %3704 = vmatprep.subr.bf16.mxu1 %v4087_v4  ;;  %s5014_s25 = smov 120  }
  0x1a   : > { %s318_s21 = scalar_lea.vmem %s4991_s0, %s3101_s26  ;;  %3685 = vmatpush3.bf16.msra.mxu0 %v3684_v11  ;;  %s5010_s26 = smov 56  }
  0x1b   : > { %v325_v10 = vld [vmem:[%s318_s21] sm:$0xff]  ;;  %3686 = vmatprep.subr.bf16.mxu0 %v4087_v4  ;;  %s5001_s20 = smov 40   ;;  %s5005_s21 = smov 32  }
  0x1c   : > { %327 = vperm.xlu0 %3895, %v325_v10   ;;  %3706 = vmatpush3.bf16.msra.mxu1 %v3705_v48  ;;  %s5002_s10 = smov 16  }
  0x1d   : > { %3415 = vmatprep.subr.mxu1 %v4089_v14 }
  0x1e   : > { %3688 = vmatpush3.bf16.msra.mxu0 %v3687_v15 }
  0x1f   : > { %3689 = vmatprep.subr.bf16.mxu0 %v4087_v4 }
  0x22   : > { %3691 = vmatpush3.bf16.msra.mxu0 %v3690_v18 }
  0x23   : > { %3692 = vmatprep.subr.bf16.mxu0 %v4087_v4 }
  0x26   : > { %3694 = vmatpush3.bf16.msra.mxu0 %v3693_v21 }
  0x27   : > { %3695 = vmatprep.subr.bf16.mxu0 %v4087_v4 }
  0x2a   : > { %3697 = vmatpush3.bf16.msra.mxu0 %v3696_v24 }
  0x2b   : > { %3698 = vmatprep.subr.bf16.mxu0 %v4087_v4 }
  0x2e   : > { %3700 = vmatpush3.bf16.msra.mxu0 %v3699_v27 }
  0x2f   : > { %3719 = vmatprep.subr.bf16.mxu0 %v4087_v4 }
  0x9b   : > { %v328_v30 = vpop.permute.xlu0 %327 }
  0x9c   : > { %vm329_vm1 = vcmp.eq.s32.totalorder %v4272_v29, %v328_v30 }
  0x9d   : > { %3402 = vmatmul.mubr.msk.f32.vlgmr.msra.gmra.mrb[0].mxu0 %vm329_vm1, %v4090_v31 }
  0x9e   : > { %3509 = vmatprep.mubr.msk.f32.mxu0 %vm4088_vm0, %v4089_v14 }
 0x170   : > { %v416_v33 = vpop.f32.mrb[0].mxu0 }
 0x171   : > { %v4280_v34 = vadd.f32 %v416_v33, %v349_v32  ;;  %v3403_v35 = vpop.f32.mrb[1].mxu0 }
 0x173   : > { %v453_v36 = vsel %vm452_vm2, %v4280_v34, 0.0 }
 0x174   : > { %454 = vadd.xlane.f32.xlu0 %v453_v36 }
 0x201   : > { %v455_v37 = vpop.xlane.xlu0 %454 }
 0x202   : > { %v457_v38 = vmul.f32 0.03125, %v455_v37 }
 0x204   : > { %v458_v39 = vsub.f32 %v4280_v34, %v457_v38 }
 0x206   : > { %v459_v40 = vmul.f32 %v458_v39, %v458_v39 }
 0x208   : > { %v460_v41 = vsel %vm452_vm2, %v459_v40, 0.0 }
 0x209   : > { %461 = vadd.xlane.f32.xlu1 %v460_v41 }
 0x296   : > { %v462_v49 = vpop.xlane.xlu1 %461 }
 0x297   : > { %v463_v50 = vmul.f32 0.03125, %v462_v49 }
 0x299   : > { %v464_v51 = vadd.f32 1e-05, %v463_v50 }
 0x29b   : > { %3916 = vrsqrt.f32 %v464_v51 }
 0x2a5   : > { %v3917_v52 = vpop.eup %3916 }
 0x2a6   : > { %v466_v54 = vmul.f32 %v3917_v52, %v458_v39 }
 0x2a8   : > { %v471_v56 = vmul.f32 %v3120_v53, %v466_v54 }
 0x2aa   : > { %v476_v57 = vadd.f32 %v3121_v55, %v471_v56 }
 0x2ac   : > { %3413 = vmatmul.mubr.msk.f32.vlgmr.msra.gmra.mrb[0].mxu1 %vm452_vm2, %v476_v57 }
 0x2ad   : > { %3417 = vmatprep.mubr.msk.f32.mxu1 %vm4088_vm0, %v4089_v14 }
 0x37f   : > { %v550_v59 = vpop.f32.mrb[0].mxu1 }
 0x380   : > { %v4326_v60 = vadd.f32 %v3122_v58, %v550_v59  ;;  %v3414_v61 = vpop.f32.mrb[1].mxu1 }
 0x382   : > { %643 = vrot.lane.b32.xlu0 %v4326_v60, %s5008_s22  ;;  %555 = vrot.lane.b32.xlu1 %v4326_v60, %s4092_s23  ;;  %s5015_s22 = sand.u32 1, %s4076_s28  }
 0x3f4   : > { %v556_v62 = vpop.permute.xlu1 %555  ;;  %v644_v63 = vpop.permute.xlu0 %643 }
 0x3f5   : > { %3416 = vmatpush3.xpose.msk.msra.mxu1 %vm557_vm3, %v556_v62 }
 0x3f6   : > { %3420 = vmatprep.subr.mxu1 %v4089_v14 }
 0x3f8   : > { %3418 = vmatmul.mubr.msk.f32.vlgmr.msra.gmra.mrb[2].mxu1 %vm557_vm3, %v4326_v60 }
 0x3f9   : > { %3421 = vmatpush3.msra.mxu1 %v644_v63  ;;  %3422 = vmatprep.mubr.msk.f32.mxu1 %vm4088_vm0, %v4089_v14 }
 0x3fa   : > { %3425 = vmatprep.subr.mxu1 %v4089_v14 }
 0x4cb   : > { %v628_v3 = vpop.f32.mrb[2].mxu1 }
 0x4cc   : > { %v629_v5 = vadd.f32 %v628_v3, %v4340_v2  ;;  %v3419_v6 = vpop.f32.mrb[3].mxu1  ;;  %v3901_v3 = vpack.i.bf16 %v4308_v47, %v4299_v44 }
 0x4ce   : > { %v632_v7 = vsel %vm557_vm3, %v629_v5, -inf }
 0x4cf   : > { %633 = vmax.xlane.f32.xlu1 %v632_v7 }
 0x4e0   : > { %721 = vrot.lane.b32.xlu1 %v4326_v60, %s4094_s24 }
 0x55c   : > { %v634_v8 = vpop.xlane.xlu1 %633 }
 0x55d   : > { %v635_v9 = vsub.f32 %v629_v5, %v634_v8 }
 0x55f   : > { %v636_v10 = vmul.f32 1.442695, %v635_v9 }
 0x560   : > { %v722_v17 = vpop.permute.xlu1 %721 }
 0x561   : > { %3918 = vpow2.f32 %v636_v10 }
 0x56b   : > { %v3919_v11 = vpop.eup %3918 }
 0x56c   : > { %v638_v12 = vsel %vm557_vm3, %v3919_v11, 0.0 }
 0x56d   : > { %639 = vadd.xlane.f32.xlu0 %v638_v12 }
 0x583   : > { %719 = vrot.lane.b32.xlu0 %v4326_v60, %s5014_s25  ;;  %s5029_s25 = smov 16  }
 0x5fa   : > { %v640_v13 = vpop.xlane.xlu0 %639 }
 0x5fb   : > { %3920 = vrcp.f32 %v640_v13 }
 0x5fe   : > { %v720_v18 = vpop.permute.xlu0 %719 }
 0x605   : > { %v3921_v15 = vpop.eup %3920 }
 0x606   : > { %v642_v16 = vmul.f32 %v3921_v15, %v3919_v11 }
 0x608   : > { %3423 = vmatmul.mubr.msk.f32.vlgmr.msra.gmra.mrb[4].mxu1 %vm557_vm3, %v642_v16 }
 0x609   : > { %3426 = vmatpush3.xpose.msk.msra.mxu1 %vm557_vm3, %v722_v17  ;;  %3427 = vmatprep.mubr.msk.f32.mxu1 %vm4088_vm0, %v4089_v14 }
 0x60a   : > { %3430 = vmatprep.subr.mxu1 %v4089_v14 }
 0x60c   : > { %3428 = vmatmul.mubr.msk.f32.vlgmr.msra.gmra.mrb[6].mxu1 %vm557_vm3, %v720_v18 }
 0x60d   : > { %3432 = vmatprep.mubr.msk.f32.mxu1 %vm4088_vm0, %v4089_v14 }
 0x6db   : > { %v4357_v19 = vpop.f32.mrb[4].mxu1 }
 0x6dc   : > { %v3424_v20 = vpop.f32.mrb[5].mxu1 }
 0x6df   : > { %v793_v21 = vpop.f32.mrb[6].mxu1 }
 0x6e0   : > { %v794_v22 = vadd.f32 %v793_v21, %v4340_v2  ;;  %v3429_v23 = vpop.f32.mrb[7].mxu1 }
 0x6e2   : > { %v797_v24 = vsel %vm557_vm3, %v794_v22, -inf }
 0x6e3   : > { %798 = vmax.xlane.f32.xlu0 %v797_v24 }
 0x6f9   : > { %808 = vrot.lane.b32.xlu0 %v4326_v60, %s5010_s26  ;;  %s5028_s26 = smov 8  }
 0x6fd   : > { %884 = vrot.lane.b32.xlu0 %v4326_v60, %s4097_s12 }
 0x770   : > { %v799_v25 = vpop.xlane.xlu0 %798 }
 0x771   : > { %v800_v26 = vsub.f32 %v794_v22, %v799_v25 }
 0x773   : > { %v801_v27 = vmul.f32 1.442695, %v800_v26  ;;  %v3136_v26 = vld [vmem:[%s4993_s2 + $0x3] ss:$0 sm:$0xff] }
 0x774   : > { %v809_v28 = vpop.permute.xlu0 %808 }
 0x775   : > { %3922 = vpow2.f32 %v801_v27  ;;  %3431 = vmatpush3.msra.mxu1 %v809_v28 }
 0x776   : > { %3435 = vmatprep.subr.mxu1 %v4089_v14 }
 0x778   : > { %v885_v36 = vpop.permute.xlu0 %884 }
 0x77f   : > { %v3923_v29 = vpop.eup %3922 }
 0x780   : > { %v803_v30 = vsel %vm557_vm3, %v3923_v29, 0.0 }
 0x781   : > { %804 = vadd.xlane.f32.xlu1 %v803_v30 }
 0x792   : > { %886 = vrot.lane.b32.xlu1 %v4326_v60, %s5012_s13 }
 0x80e   : > { %v805_v31 = vpop.xlane.xlu1 %804 }
 0x80f   : > { %3924 = vrcp.f32 %v805_v31 }
 0x812   : > { %v887_v35 = vpop.permute.xlu1 %886 }
 0x819   : > { %v3925_v32 = vpop.eup %3924 }
 0x81a   : > { %v807_v33 = vmul.f32 %v3925_v32, %v3923_v29 }
 0x81c   : > { %3433 = vmatmul.mubr.msk.f32.vlgmr.msra.gmra.mrb[8].mxu1 %vm557_vm3, %v807_v33 }
 0x81d   : > { %3436 = vmatpush3.xpose.msk.msra.mxu1 %vm557_vm3, %v887_v35  ;;  %3437 = vmatprep.mubr.msk.f32.mxu1 %vm4088_vm0, %v4089_v14 }
 0x81e   : > { %3440 = vmatprep.subr.mxu1 %v4089_v14 }
 0x820   : > { %3438 = vmatmul.mubr.msk.f32.vlgmr.msra.gmra.mrb[10].mxu1 %vm557_vm3, %v885_v36 }
 0x821   : > { %3442 = vmatprep.mubr.msk.f32.mxu1 %vm4088_vm0, %v4089_v14 }
 0x8ef   : > { %v880_v37 = vpop.f32.mrb[8].mxu1 }
 0x8f0   : > { %v3434_v38 = vpop.f32.mrb[9].mxu1 }
 0x8f3   : > { %v958_v39 = vpop.f32.mrb[10].mxu1 }
 0x8f4   : > { %v959_v40 = vadd.f32 %v958_v39, %v4340_v2  ;;  %v3439_v41 = vpop.f32.mrb[11].mxu1  ;;  %v434_v39 = vld [vmem:[%s4995_s4 + $0x10] sm:$0xff] }
 0x8f6   : > { %v962_v46 = vsel %vm557_vm3, %v959_v40, -inf }
 0x8f7   : > { %963 = vmax.xlane.f32.xlu0 %v962_v46  ;;  %v436_v46 = vld [vmem:[%s4996_s5] sm:$0xff] }
 0x90d   : > { %973 = vrot.lane.b32.xlu0 %v4326_v60, %s5007_s17  ;;  %s5022_s17 = smov 72  }
 0x911   : > { %1049 = vrot.lane.b32.xlu0 %v4326_v60, %s5013_s18  ;;  %s4603_s18 = sshll.u32 %s5015_s22, 3  ;;  %s5026_s22 = smov 40  }
 0x912   : > { %s307_s13 = scalar_lea.vmem [#allocation4], %s4603_s18 }
 0x984   : > { %v964_v48 = vpop.xlane.xlu0 %963 }
 0x985   : > { %v965_v49 = vsub.f32 %v959_v40, %v964_v48  ;;  %v435_v40 = vld [vmem:[%s4995_s4 + $0x18] sm:$0xff]  ;;  %v437_v48 = vld [vmem:[%s4996_s5 + $0x8] sm:$0xff] }
 0x986   : > { %v3717_v41 = vpack.c.bf16 %v435_v40, %v434_v39 }
 0x987   : > { %v966_v50 = vmul.f32 1.442695, %v965_v49  ;;  %v3720_v49 = vpack.c.bf16 %v437_v48, %v436_v46  ;;  %v3149_v46 = vld [vmem:[%s4996_s5 + $0x110] sm:$0xff]  ;;  %v3150_v48 = vld [vmem:[%s4996_s5 + $0x118] sm:$0xff] }
 0x988   : > { %v974_v51 = vpop.permute.xlu0 %973 }
 0x989   : > { %3926 = vpow2.f32 %v966_v50  ;;  %3441 = vmatpush3.msra.mxu1 %v974_v51  ;;  %3721 = vmatpush3.bf16.msra.mxu0 %v3720_v49  ;;  %v3753_v49 = vpack.c.bf16 %v3150_v48, %v3149_v46 }
 0x98a   : > { %3445 = vmatprep.subr.mxu1 %v4089_v14  ;;  %3722 = vmatprep.subr.bf16.mxu0 %v4087_v4 }
 0x98c   : > { %v1050_v58 = vpop.permute.xlu0 %1049 }
 0x993   : > { %v3927_v52 = vpop.eup %3926 }
 0x994   : > { %v968_v53 = vsel %vm557_vm3, %v3927_v52, 0.0 }
 0x995   : > { %969 = vadd.xlane.f32.xlu1 %v968_v53 }
 0x9a6   : > { %1051 = vrot.lane.b32.xlu1 %v4326_v60, %s5011_s19  ;;  %s5019_s19 = smov 120  }
 0xa22   : > { %v970_v54 = vpop.xlane.xlu1 %969 }
 0xa23   : > { %3928 = vrcp.f32 %v970_v54  ;;  %v3138_v54 = vld [vmem:[%s4993_s2 + $0x4] ss:$0 sm:$0xff] }
 0xa26   : > { %v1052_v57 = vpop.permute.xlu1 %1051 }
 0xa2d   : > { %v3929_v55 = vpop.eup %3928 }
 0xa2e   : > { %v972_v56 = vmul.f32 %v3929_v55, %v3927_v52 }
 0xa30   : > { %3443 = vmatmul.mubr.msk.f32.vlgmr.msra.gmra.mrb[12].mxu1 %vm557_vm3, %v972_v56  ;;  %v3139_v56 = vld [vmem:[%s4993_s2 + $0x5] ss:$0 sm:$0xff] }
 0xa31   : > { %3446 = vmatpush3.xpose.msk.msra.mxu1 %vm557_vm3, %v1052_v57  ;;  %3447 = vmatprep.mubr.msk.f32.mxu1 %vm4088_vm0, %v4089_v14 }
 0xa32   : > { %3450 = vmatprep.subr.mxu1 %v4089_v14 }
 0xa34   : > { %3448 = vmatmul.mubr.msk.f32.vlgmr.msra.gmra.mrb[14].mxu1 %vm557_vm3, %v1050_v58 }
 0xa35   : > { %3452 = vmatprep.mubr.msk.f32.mxu1 %vm4088_vm0, %v4089_v14 }
 0xb03   : > { %v1045_v59 = vpop.f32.mrb[12].mxu1 }
 0xb04   : > { %v3444_v61 = vpop.f32.mrb[13].mxu1 }
 0xb05   : > { %v439_v61 = vld [vmem:[%s4996_s5 + $0x18] sm:$0xff] }
 0xb07   : > { %v1123_v62 = vpop.f32.mrb[14].mxu1 }
 0xb08   : > { %v1124_v63 = vadd.f32 %v1123_v62, %v4340_v2  ;;  %v3449_v0 = vpop.f32.mrb[15].mxu1 }
 0xb09   : > { %v441_v0 = vld [vmem:[%s4996_s5 + $0x28] sm:$0xff] }
 0xb0a   : > { %v1127_v1 = vsel %vm557_vm3, %v1124_v63, -inf }
 0xb0b   : > { %1128 = vmax.xlane.f32.xlu0 %v1127_v1 }
 0xb21   : > { %1138 = vrot.lane.b32.xlu0 %v4326_v60, %s5001_s20  ;;  %s5003_s20 = smov 8  }
 0xb25   : > { %3902 = vrot.lane.b32.xlu0 %v3901_v3, %s5005_s21  ;;  %v442_v3 = vld [vmem:[%s4996_s5 + $0x30] sm:$0xff] }
 0xb29   : > { %1219 = vrot.lane.b32.xlu0 %v1045_v59, %s5002_s10  ;;  %s5004_s10 = smov 24   ;;  %v438_v59 = vld [vmem:[%s4996_s5 + $0x10] sm:$0xff] }
 0xb2a   : > { %v3723_v62 = vpack.c.bf16 %v439_v61, %v438_v59  ;;  %v3158_v59 = vld [vmem:[%s4996_s5 + $0x158] sm:$0xff] }
 0xb2c   : > { %3724 = vmatpush3.bf16.msra.mxu0 %v3723_v62  ;;  %v3159_v62 = vld [vmem:[%s4996_s5 + $0x160] sm:$0xff] }
 0xb2d   : > { %3725 = vmatprep.subr.bf16.mxu0 %v4087_v4 }
 0xb98   : > { %v1129_v5 = vpop.xlane.xlu0 %1128 }
 0xb99   : > { %v1130_v6 = vsub.f32 %v1124_v63, %v1129_v5  ;;  %v440_v63 = vld [vmem:[%s4996_s5 + $0x20] sm:$0xff]  ;;  %v443_v5 = vld [vmem:[%s4996_s5 + $0x38] sm:$0xff] }
 0xb9a   : > { %v3726_v1 = vpack.c.bf16 %v441_v0, %v440_v63  ;;  %v3160_v63 = vld [vmem:[%s4996_s5 + $0x168] sm:$0xff] }
 0xb9b   : > { %v1131_v7 = vmul.f32 1.442695, %v1130_v6  ;;  %v3729_v6 = vpack.c.bf16 %v443_v5, %v442_v3  ;;  %v3768_v0 = vpack.c.bf16 %v3160_v63, %v3159_v62  ;;  %v3162_v3 = vld [vmem:[%s4996_s5 + $0x178] sm:$0xff] }
 0xb9c   : > { %v1139_v8 = vpop.permute.xlu0 %1138  ;;  %3727 = vmatpush3.bf16.msra.mxu0 %v3726_v1  ;;  %v3161_v1 = vld [vmem:[%s4996_s5 + $0x170] sm:$0xff] }
 0xb9d   : > { %3930 = vpow2.f32 %v1131_v7  ;;  %3451 = vmatpush3.msra.mxu1 %v1139_v8  ;;  %3728 = vmatprep.subr.bf16.mxu0 %v4087_v4  ;;  %v444_v7 = vld [vmem:[%s4996_s5 + $0x40] sm:$0xff]  ;;  %v445_v8 = vld [vmem:[%s4996_s5 + $0x48] sm:$0xff]  ;;  %v3771_v5 = vpack.c.bf16 %v3162_v3, %v3161_v1 }
 0xb9e   : > { %3707 = vmatprep.subr.bf16.mxu1 %v4087_v4 }
 0xba0   : > { %v3903_v12 = vpop.permute.xlu0 %3902  ;;  %3730 = vmatpush3.bf16.msra.mxu0 %v3729_v6  ;;  %v3163_v6 = vld [vmem:[%s4993_s2 + $0x13] ss:$0 sm:$0xff] }
 0xba1   : > { %v3905_v15 = vunpack.i.h.bf16 %v3903_v12  ;;  %v3904_v16 = vunpack.i.l.bf16 %v3903_v12  ;;  %3731 = vmatprep.subr.bf16.mxu0 %v4087_v4 }
 0xba3   : > { %v3711_v20 = vpack.c.bf16 %v3905_v15, %v3904_v16  ;;  %v451_v15 = vld [vmem:[%s4996_s5 + $0x78] sm:$0xff] }
 0xba4   : > { %v1220_v22 = vpop.permute.xlu0 %1219 }
 0xba7   : > { %v3931_v9 = vpop.eup %3930 }
 0xba8   : > { %v1133_v60 = vsel %vm557_vm3, %v3931_v9, 0.0 }
 0xba9   : > { %1134 = vadd.xlane.f32.xlu1 %v1133_v60  ;;  %v3732_v60 = vpack.c.bf16 %v445_v8, %v444_v7 }
 0xbab   : > { %3733 = vmatpush3.bf16.msra.mxu0 %v3732_v60 }
 0xbac   : > { %3734 = vmatprep.subr.bf16.mxu0 %v4087_v4 }
 0xbba   : > { %3897 = vrot.lane.b32.xlu1 %v3896_v45, %s5005_s21  ;;  %s5027_s21 = smov 32  }
 0xbbe   : > { %1215 = vrot.lane.b32.xlu1 %v880_v37, %s5003_s20  ;;  %v432_v37 = vld [vmem:[%s4995_s4] sm:$0xff]  ;;  %s5021_s20 = smov 80  }
 0xc36   : > { %v1135_v44 = vpop.xlane.xlu1 %1134 }
 0xc37   : > { %3932 = vrcp.f32 %v1135_v44  ;;  %v447_v44 = vld [vmem:[%s4996_s5 + $0x58] sm:$0xff] }
 0xc3a   : > { %v3898_v47 = vpop.permute.xlu1 %3897 }
 0xc3b   : > { %v3900_v10 = vunpack.i.h.bf16 %v3898_v47  ;;  %v3899_v11 = vunpack.i.l.bf16 %v3898_v47 }
 0xc3d   : > { %v3708_v17 = vpack.c.bf16 %v3900_v10, %v3899_v11  ;;  %v448_v10 = vld [vmem:[%s4996_s5 + $0x60] sm:$0xff]  ;;  %v449_v11 = vld [vmem:[%s4996_s5 + $0x68] sm:$0xff] }
 0xc3e   : > { %v1216_v45 = vpop.permute.xlu1 %1215  ;;  %v3738_v12 = vpack.c.bf16 %v449_v11, %v448_v10 }
 0xc3f   : > { %v1226_v21 = vsel %vm557_vm3, %v4357_v19, %v1216_v45 }
 0xc40   : > { %v1228_v23 = vsel %vm1227_vm5, %v1226_v21, %v1220_v22 }
 0xc41   : > { %v3933_v13 = vpop.eup %3932 }
 0xc42   : > { %v1137_v18 = vmul.f32 %v3933_v13, %v3931_v9  ;;  %v446_v9 = vld [vmem:[%s4996_s5 + $0x50] sm:$0xff] }
 0xc43   : > { %v3735_v47 = vpack.c.bf16 %v447_v44, %v446_v9  ;;  %v450_v13 = vld [vmem:[%s4996_s5 + $0x70] sm:$0xff] }
 0xc44   : > { %3453 = vmatmul.mubr.msk.f32.vlgmr.msra.gmra.mrb[16].mxu1 %vm557_vm3, %v1137_v18  ;;  %v3741_v16 = vpack.c.bf16 %v451_v15, %v450_v13  ;;  %v3144_v18 = vld [vmem:[%s4995_s4 + $0x48] sm:$0xff]  ;;  %v3165_v44 = vld [vmem:[%s4993_s2 + $0x14] ss:$0 sm:$0xff] }
 0xc45   : > { %3709 = vmatpush3.bf16.msra.mxu1 %v3708_v17  ;;  %3463 = vmatprep.mubr.msk.f32.mxu1 %vm4088_vm0, %v4089_v14  ;;  %v3143_v17 = vld [vmem:[%s4995_s4 + $0x40] sm:$0xff] }
 0xc46   : > { %3710 = vmatprep.subr.bf16.mxu1 %v4087_v4  ;;  %3736 = vmatpush3.bf16.msra.mxu0 %v3735_v47 }
 0xc47   : > { %3737 = vmatprep.subr.bf16.mxu0 %v4087_v4 }
 0xc49   : > { %3712 = vmatpush3.bf16.msra.mxu1 %v3711_v20  ;;  %v3744_v20 = vpack.c.bf16 %v3144_v18, %v3143_v17 }
 0xc4a   : > { %3713 = vmatprep.subr.bf16.mxu1 %v4087_v4  ;;  %3739 = vmatpush3.bf16.msra.mxu0 %v3738_v12 }
 0xc4b   : > { %3740 = vmatprep.subr.bf16.mxu0 %v4087_v4 }
 0xc4e   : > { %3742 = vmatpush3.bf16.msra.mxu0 %v3741_v16 }
 0xc4f   : > { %3773 = vmatprep.subr.bf16.mxu0 %v4087_v4 }
 0xd17   : > { %v1210_v42 = vpop.f32.mrb[16].mxu1 }
 0xd18   : > { %1223 = vrot.lane.b32.xlu1 %v1210_v42, %s5004_s10  ;;  %v3454_v43 = vpop.f32.mrb[17].mxu1  ;;  %v3140_v42 = vld [vmem:[%s4993_s2 + $0x6] ss:$0 sm:$0xff]  ;;  %s5020_s10 = smov 104  }
 0xd8a   : > { %v1224_v24 = vpop.permute.xlu1 %1223 }
 0xd8b   : > { %v1230_v25 = vsel %vm1229_vm6, %v1228_v23, %v1224_v24 }
 0xd8c   : > { %3464 = vmatmul.mubr.msk.f32.vlgmr.msra.gmra.mrb[18].mxu1 %vm452_vm2, %v1230_v25 }
 0xd8d   : > { %3474 = vmatprep.mubr.msk.f32.mxu1 %vm4088_vm0, %v4089_v14 }
 0xe5f   : > { %v1320_v27 = vpop.f32.mrb[18].mxu1 }
 0xe60   : > { %v1321_v28 = vadd.f32 %v3136_v26, %v1320_v27  ;;  %v3465_v19 = vpop.f32.mrb[19].mxu1 }
 0xe62   : > { %v4427_v29 = vadd.f32 %v1321_v28, %v4280_v34  ;;  %v433_v34 = vld [vmem:[%s4995_s4 + $0x8] sm:$0xff] }
 0xe63   : > { %v3714_v38 = vpack.c.bf16 %v433_v34, %v432_v37  ;;  %v3148_v37 = vld [vmem:[%s4996_s5 + $0x108] sm:$0xff] }
 0xe64   : > { %v1325_v30 = vsel %vm452_vm2, %v4427_v29, 0.0 }
 0xe65   : > { %1326 = vadd.xlane.f32.xlu0 %v1325_v30  ;;  %3715 = vmatpush3.bf16.msra.mxu1 %v3714_v38 }
 0xe66   : > { %3716 = vmatprep.subr.bf16.mxu1 %v4087_v4 }
 0xe69   : > { %3718 = vmatpush3.bf16.msra.mxu1 %v3717_v41 }
 0xe6a   : > { %3743 = vmatprep.subr.bf16.mxu1 %v4087_v4 }
 0xef2   : > { %v1327_v31 = vpop.xlane.xlu0 %1326 }
 0xef3   : > { %v1328_v32 = vmul.f32 0.03125, %v1327_v31  ;;  %v3145_v31 = vld [vmem:[%s4995_s4 + $0x50] sm:$0xff] }
 0xef5   : > { %v1329_v33 = vsub.f32 %v4427_v29, %v1328_v32  ;;  %v3146_v32 = vld [vmem:[%s4995_s4 + $0x58] sm:$0xff] }
 0xef7   : > { %v1330_v35 = vmul.f32 %v1329_v33, %v1329_v33 }
 0xef9   : > { %v1331_v36 = vsel %vm452_vm2, %v1330_v35, 0.0  ;;  %v3142_v35 = vld [vmem:[%s4993_s2 + $0x7] ss:$0 sm:$0xff] }
 0xefa   : > { %1332 = vadd.xlane.f32.xlu1 %v1331_v36  ;;  %v3147_v36 = vld [vmem:[%s4996_s5 + $0x100] sm:$0xff] }
 0xefb   : > { %v3750_v40 = vpack.c.bf16 %v3148_v37, %v3147_v36 }
 0xf87   : > { %v1333_v50 = vpop.xlane.xlu1 %1332 }
 0xf88   : > { %v1334_v51 = vmul.f32 0.03125, %v1333_v50  ;;  %v3152_v50 = vld [vmem:[%s4996_s5 + $0x128] sm:$0xff] }
 0xf8a   : > { %v1335_v52 = vadd.f32 1e-05, %v1334_v51 }
 0xf8c   : > { %3934 = vrsqrt.f32 %v1335_v52  ;;  %v3153_v52 = vld [vmem:[%s4996_s5 + $0x130] sm:$0xff] }
 0xf96   : > { %v3935_v53 = vpop.eup %3934 }
 0xf97   : > { %v1337_v55 = vmul.f32 %v3935_v53, %v1329_v33  ;;  %v3747_v33 = vpack.c.bf16 %v3146_v32, %v3145_v31  ;;  %v3154_v53 = vld [vmem:[%s4996_s5 + $0x138] sm:$0xff]  ;;  %v3192_v32 = vld [vmem:[%s4993_s2 + $0xa] ss:$0 sm:$0xff] }
 0xf99   : > { %v1342_v57 = vmul.f32 %v3138_v54, %v1337_v55  ;;  %v3759_v54 = vpack.c.bf16 %v3154_v53, %v3153_v52  ;;  %v3155_v55 = vld [vmem:[%s4996_s5 + $0x140] sm:$0xff] }
 0xf9b   : > { %v1347_v58 = vadd.f32 %v3139_v56, %v1342_v57  ;;  %v3156_v56 = vld [vmem:[%s4996_s5 + $0x148] sm:$0xff] }
 0xf9c   : > { %v3762_v57 = vpack.c.bf16 %v3156_v56, %v3155_v55 }
 0xf9d   : > { %3475 = vmatmul.mubr.msk.f32.vlgmr.msra.gmra.mrb[20].mxu1 %vm452_vm2, %v1347_v58  ;;  %v3157_v58 = vld [vmem:[%s4996_s5 + $0x150] sm:$0xff] }
 0xf9e   : > { %3520 = vmatprep.mubr.msk.f32.mxu1 %vm4088_vm0, %v4089_v14  ;;  %3745 = vmatpush3.bf16.msra.mxu1 %v3744_v20  ;;  %v3765_v61 = vpack.c.bf16 %v3158_v59, %v3157_v58  ;;  %v4626_v20 = vld [vmem:[%s4994_s3 + $0x20] sm:$0xff] }
 0xf9f   : > { %3746 = vmatprep.subr.bf16.mxu1 %v4087_v4 }
 0xfa2   : > { %3748 = vmatpush3.bf16.msra.mxu1 %v3747_v33 }
 0xfa3   : > { %3749 = vmatprep.subr.bf16.mxu1 %v4087_v4 }
0x1070   : > { %v1421_v43 = vpop.f32.mrb[20].mxu1 }
0x1071   : > { %v1422_v45 = vadd.f32 %v3140_v42, %v1421_v43  ;;  %v3476_v21 = vpop.f32.mrb[21].mxu1  ;;  %v4631_v42 = vld [vmem:[%s4994_s3 + $0x28] sm:$0xff] }
0x1072   : > { %v3774_v43 = vpack.c.bf16 %v4631_v42, %v4626_v20  ;;  %v4643_v21 = vld [vmem:[%s4994_s3 + $0x38] sm:$0xff] }
0x1073   : > { %v1425_v22 = vmul.f32 %v1422_v45, %v1422_v45 }
0x1075   : > { %v1426_v23 = vmul.f32 %v1425_v22, %v1422_v45 }
0x1077   : > { %v1427_v24 = vmul.f32 0.044715, %v1426_v23 }
0x1079   : > { %v1428_v25 = vadd.f32 %v1427_v24, %v1422_v45 }
0x107b   : > { %v1429_v26 = vmul.f32 0.7978846, %v1428_v25 }
0x107d   : > { %3936 = vtanh.f32 %v1429_v26 }
0x1087   : > { %v3937_v27 = vpop.eup %3936 }
0x1088   : > { %v1431_v28 = vadd.f32 1.0, %v3937_v27  ;;  %v3190_v27 = vld [vmem:[%s4993_s2 + $0x8] ss:$0 sm:$0xff] }
0x108a   : > { %v1432_v19 = vmul.f32 0.5, %v1431_v28 }
0x108c   : > { %v1433_v30 = vmul.f32 %v1432_v19, %v1422_v45  ;;  %v4638_v45 = vld [vmem:[%s4994_s3 + $0x30] sm:$0xff]  ;;  %v3191_v19 = vld [vmem:[%s4993_s2 + $0x9] ss:$0 sm:$0xff] }
0x108d   : > { %v3777_v22 = vpack.c.bf16 %v4643_v21, %v4638_v45 }
0x108e   : > { %3510 = vmatmul.mubr.f32.vlgmr.msra.gmra.mrb[2].mxu0 %v1433_v30 }
0x108f   : > { %3566 = vmatprep.mubr.msk.f32.mxu0 %vm4088_vm0, %v4089_v14  ;;  %3775 = vmatpush3.bf16.msra.mxu0 %v3774_v43 }
0x1090   : > { %3776 = vmatprep.subr.bf16.mxu0 %v4087_v4 }
0x1093   : > { %3778 = vmatpush3.bf16.msra.mxu0 %v3777_v22 }
0x1094   : > { %3569 = vmatprep.subr.mxu0 %v4089_v14 }
0x1161   : > { %v1504_v34 = vpop.f32.mrb[2].mxu0 }
0x1162   : > { %v1505_v38 = vadd.f32 %v3142_v35, %v1504_v34  ;;  %v3511_v39 = vpop.f32.mrb[3].mxu0 }
0x1164   : > { %v4541_v41 = vadd.f32 %v1505_v38, %v4427_v29  ;;  %v3151_v29 = vld [vmem:[%s4996_s5 + $0x120] sm:$0xff] }
0x1165   : > { %v3756_v51 = vpack.c.bf16 %v3152_v50, %v3151_v29 }
0x1166   : > { %3521 = vmatmul.mubr.msk.f32.vlgmr.msra.gmra.mrb[22].mxu1 %vm452_vm2, %v4541_v41 }
0x1167   : > { %3751 = vmatpush3.bf16.msra.mxu1 %v3750_v40  ;;  %3555 = vmatprep.mubr.msk.f32.mxu1 %vm4088_vm0, %v4089_v14 }
0x1168   : > { %3752 = vmatprep.subr.bf16.mxu1 %v4087_v4 }
0x116b   : > { %3754 = vmatpush3.bf16.msra.mxu1 %v3753_v49 }
0x116c   : > { %3755 = vmatprep.subr.bf16.mxu1 %v4087_v4 }
0x116f   : > { %3757 = vmatpush3.bf16.msra.mxu1 %v3756_v51 }
0x1170   : > { %3758 = vmatprep.subr.bf16.mxu1 %v4087_v4 }
0x1173   : > { %3760 = vmatpush3.bf16.msra.mxu1 %v3759_v54 }
0x1174   : > { %3761 = vmatprep.subr.bf16.mxu1 %v4087_v4 }
0x1177   : > { %3763 = vmatpush3.bf16.msra.mxu1 %v3762_v57 }
0x1178   : > { %3764 = vmatprep.subr.bf16.mxu1 %v4087_v4 }
0x117b   : > { %3766 = vmatpush3.bf16.msra.mxu1 %v3765_v61 }
0x117c   : > { %3767 = vmatprep.subr.bf16.mxu1 %v4087_v4 }
0x117f   : > { %3769 = vmatpush3.bf16.msra.mxu1 %v3768_v0 }
0x1180   : > { %3770 = vmatprep.subr.bf16.mxu1 %v4087_v4 }
0x1183   : > { %3772 = vmatpush3.bf16.msra.mxu1 %v3771_v5 }
0x1184   : > { %3574 = vmatprep.subr.mxu1 %v4089_v14 }
0x1239   : > { %v1606_v7 = vpop.f32.mrb[22].mxu1 }
0x123a   : > { %v1607_v8 = vadd.f32 %v3163_v6, %v1606_v7  ;;  %v3522_v9 = vpop.f32.mrb[23].mxu1 }
0x123c   : > { %v4605_v60 = vmax.f32 %v1607_v8, 0.0 }
0x123e   : > { %3556 = vmatmul.mubr.f32.vlgmr.msra.gmra.mrb[24].mxu1 %v4605_v60  ;;  %1685 = vst [vmem:[%s307_s13] sm:$0xff] %v4605_v60 }
0x123f   : > { %3576 = vmatprep.mubr.msk.f32.mxu1 %vm4088_vm0, %v4089_v14 }
0x1311   : > { %v1681_v47 = vpop.f32.mrb[24].mxu1 }
0x1312   : > { %v4617_v10 = vadd.f32 %v3165_v44, %v1681_v47  ;;  %v3557_v11 = vpop.f32.mrb[25].mxu1 }
0x1314   : > { %v1747_v12 = vsel %vm452_vm2, %v4617_v10, 0.0 }
0x1315   : > { %1748 = vadd.xlane.f32.xlu0 %v1747_v12 }
0x13a2   : > { %v1749_v13 = vpop.xlane.xlu0 %1748 }
0x13a3   : > { %v1750_v15 = vmul.f32 0.03125, %v1749_v13 }
0x13a5   : > { %v1751_v16 = vsub.f32 %v4617_v10, %v1750_v15 }
0x13a7   : > { %v1752_v17 = vmul.f32 %v1751_v16, %v1751_v16 }
0x13a9   : > { %v1753_v18 = vsel %vm452_vm2, %v1752_v17, 0.0 }
0x13aa   : > { %1754 = vadd.xlane.f32.xlu0 %v1753_v18 }
0x1437   : > { %v1755_v23 = vpop.xlane.xlu0 %1754 }
0x1438   : > { %v1756_v24 = vmul.f32 0.03125, %v1755_v23 }
0x143a   : > { %v1757_v25 = vadd.f32 1e-05, %v1756_v24 }
0x143c   : > { %3938 = vrsqrt.f32 %v1757_v25 }
0x1446   : > { %v3939_v26 = vpop.eup %3938 }
0x1447   : > { %v1759_v28 = vmul.f32 %v3939_v26, %v1751_v16 }
0x1449   : > { %v1764_v30 = vmul.f32 %v3190_v27, %v1759_v28 }
0x144b   : > { %v1769_v31 = vadd.f32 %v3191_v19, %v1764_v30 }
0x144d   : > { %3567 = vmatmul.mubr.msk.f32.vlgmr.msra.gmra.mrb[4].mxu0 %vm452_vm2, %v1769_v31 }
0x144e   : > { %3571 = vmatprep.mubr.msk.f32.mxu0 %vm4088_vm0, %v4089_v14 }
0x1520   : > { %v1843_v33 = vpop.f32.mrb[4].mxu0 }
0x1521   : > { %v4661_v35 = vadd.f32 %v3192_v32, %v1843_v33  ;;  %v3568_v36 = vpop.f32.mrb[5].mxu0 }
0x1523   : > { %2013 = vrot.lane.b32.xlu0 %v4661_v35, %s4094_s24  ;;  %1848 = vrot.lane.b32.xlu1 %v4661_v35, %s4092_s23  ;;  %s5023_s23 = smov 56   ;;  %s5024_s24 = smov 64  }
0x1527   : > { %2176 = vrot.lane.b32.xlu0 %v4661_v35, %s4097_s12  ;;  %2011 = vrot.lane.b32.xlu1 %v4661_v35, %s5019_s19  ;;  %s5025_s12 = smov 48   ;;  %s5030_s19 = smov 24  }
0x152b   : > { %2341 = vrot.lane.b32.xlu0 %v4661_v35, %s5020_s10  ;;  %2178 = vrot.lane.b32.xlu1 %v4661_v35, %s5021_s20 }
0x152f   : > { %2343 = vrot.lane.b32.xlu1 %v4661_v35, %s5022_s17 }
0x1595   : > { %v1849_v37 = vpop.permute.xlu1 %1848  ;;  %v2014_v34 = vpop.permute.xlu0 %2013 }
0x1596   : > { %3570 = vmatpush3.xpose.msk.msra.mxu0 %vm557_vm3, %v1849_v37 }
0x1597   : > { %3579 = vmatprep.subr.mxu0 %v4089_v14 }
0x1599   : > { %3572 = vmatmul.mubr.msk.f32.vlgmr.msra.gmra.mrb[6].mxu0 %vm557_vm3, %v4661_v35  ;;  %v2012_v38 = vpop.permute.xlu1 %2011  ;;  %v2177_v40 = vpop.permute.xlu0 %2176 }
0x159a   : > { %3580 = vmatpush3.xpose.msk.msra.mxu0 %vm557_vm3, %v2014_v34  ;;  %3581 = vmatprep.mubr.msk.f32.mxu0 %vm4088_vm0, %v4089_v14 }
0x159b   : > { %3589 = vmatprep.subr.mxu0 %v4089_v14 }
0x159d   : > { %3582 = vmatmul.mubr.msk.f32.vlgmr.msra.gmra.mrb[8].mxu0 %vm557_vm3, %v2012_v38  ;;  %v2179_v39 = vpop.permute.xlu1 %2178  ;;  %v2342_v48 = vpop.permute.xlu0 %2341 }
0x159e   : > { %3590 = vmatpush3.xpose.msk.msra.mxu0 %vm557_vm3, %v2179_v39  ;;  %3591 = vmatprep.mubr.msk.f32.mxu0 %vm4088_vm0, %v4089_v14 }
0x159f   : > { %3599 = vmatprep.subr.mxu0 %v4089_v14 }
0x15a1   : > { %3592 = vmatmul.mubr.msk.f32.vlgmr.msra.gmra.mrb[10].mxu0 %vm557_vm3, %v2177_v40  ;;  %v2344_v46 = vpop.permute.xlu1 %2343  ;;  %v3906_v40 = vpack.i.bf16 %v4631_v42, %v4626_v20 }
0x15a2   : > { %3600 = vmatpush3.xpose.msk.msra.mxu0 %vm557_vm3, %v2344_v46  ;;  %3601 = vmatprep.mubr.msk.f32.mxu0 %vm4088_vm0, %v4089_v14  ;;  %v3911_v46 = vpack.i.bf16 %v4643_v21, %v4638_v45 }
0x15a3   : > { %3779 = vmatprep.subr.bf16.mxu0 %v4087_v4 }
0x15a5   : > { %3602 = vmatmul.mubr.msk.f32.vlgmr.msra.gmra.mrb[12].mxu0 %vm557_vm3, %v2342_v48 }
0x15a6   : > { %3617 = vmatprep.mubr.msk.f32.mxu0 %vm4088_vm0, %v4089_v14 }
0x166c   : > { %v1920_v49 = vpop.f32.mrb[6].mxu0 }
0x166d   : > { %v1921_v29 = vadd.f32 %v1920_v49, %v4340_v2  ;;  %v3573_v50 = vpop.f32.mrb[7].mxu0 }
0x166f   : > { %v1924_v51 = vsel %vm557_vm3, %v1921_v29, -inf }
0x1670   : > { %1925 = vmax.xlane.f32.xlu1 %v1924_v51  ;;  %v2085_v52 = vpop.f32.mrb[8].mxu0 }
0x1671   : > { %v2086_v53 = vadd.f32 %v2085_v52, %v4340_v2  ;;  %v3583_v54 = vpop.f32.mrb[9].mxu0 }
0x1673   : > { %v2089_v55 = vsel %vm557_vm3, %v2086_v53, -inf }
0x1674   : > { %2090 = vmax.xlane.f32.xlu0 %v2089_v55  ;;  %v2250_v56 = vpop.f32.mrb[10].mxu0 }
0x1675   : > { %v2251_v57 = vadd.f32 %v2250_v56, %v4340_v2  ;;  %v3593_v58 = vpop.f32.mrb[11].mxu0 }
0x1677   : > { %v2254_v59 = vsel %vm557_vm3, %v2251_v57, -inf }
0x1678   : > { %2255 = vmax.xlane.f32.xlu0 %v2254_v59  ;;  %v2415_v61 = vpop.f32.mrb[12].mxu0 }
0x1679   : > { %v2416_v62 = vadd.f32 %v2415_v61, %v4340_v2  ;;  %v3603_v63 = vpop.f32.mrb[13].mxu0 }
0x167b   : > { %v2419_v0 = vsel %vm557_vm3, %v2416_v62, -inf }
0x167c   : > { %2420 = vmax.xlane.f32.xlu1 %v2419_v0 }
0x168d   : > { %2100 = vrot.lane.b32.xlu1 %v4661_v35, %s5023_s23  ;;  %s5016_s23 = scalar_lea.vmem [#allocation2], %s4603_s18 }
0x16fd   : > { %v1926_v1 = vpop.xlane.xlu1 %1925 }
0x16fe   : > { %v1927_v3 = vsub.f32 %v1921_v29, %v1926_v1 }
0x1700   : > { %v1928_v5 = vmul.f32 1.442695, %v1927_v3  ;;  %v3206_v3 = vld [vmem:[%s4993_s2 + $0xb] ss:$0 sm:$0xff] }
0x1701   : > { %v2091_v6 = vpop.xlane.xlu0 %2090 }
0x1702   : > { %3940 = vpow2.f32 %v1928_v5  ;;  %v2092_v7 = vsub.f32 %v2086_v53, %v2091_v6 }
0x1704   : > { %v2093_v8 = vmul.f32 1.442695, %v2092_v7 }
0x1705   : > { %v2256_v17 = vpop.xlane.xlu0 %2255 }
0x1706   : > { %3942 = vpow2.f32 %v2093_v8  ;;  %v2257_v18 = vsub.f32 %v2251_v57, %v2256_v17  ;;  %v3170_v17 = vld [vmem:[%s4995_s4 + $0x20] sm:$0xff] }
0x1708   : > { %v2258_v43 = vmul.f32 1.442695, %v2257_v18  ;;  %v3171_v18 = vld [vmem:[%s4995_s4 + $0x28] sm:$0xff] }
0x1709   : > { %v2421_v9 = vpop.xlane.xlu1 %2420 }
0x170a   : > { %v2422_v44 = vsub.f32 %v2416_v62, %v2421_v9 }
0x170c   : > { %v3941_v47 = vpop.eup %3940  ;;  %v2423_v11 = vmul.f32 1.442695, %v2422_v44 }
0x170d   : > { %v1930_v2 = vsel %vm557_vm3, %v3941_v47, 0.0  ;;  %v2101_v24 = vpop.permute.xlu1 %2100 }
0x170e   : > { %3944 = vpow2.f32 %v2423_v11  ;;  %1931 = vadd.xlane.f32.xlu0 %v1930_v2  ;;  %v1686_v2 = vsub.f32 %v4617_v10, %v4541_v41 }
0x170f   : > { %3946 = vpow2.f32 %v2258_v43  ;;  %v3786_v43 = vpack.c.bf16 %v3171_v18, %v3170_v17 }
0x1710   : > { %v3943_v12 = vpop.eup %3942 }
0x1711   : > { %v2095_v13 = vsel %vm557_vm3, %v3943_v12, 0.0 }
0x1712   : > { %2096 = vadd.xlane.f32.xlu1 %v2095_v13 }
0x1718   : > { %v3945_v15 = vpop.eup %3944 }
0x1719   : > { %v2425_v16 = vsel %vm557_vm3, %v3945_v15, 0.0  ;;  %v3947_v22 = vpop.eup %3946 }
0x171a   : > { %2426 = vadd.xlane.f32.xlu1 %v2425_v16  ;;  %v2260_v23 = vsel %vm557_vm3, %v3947_v22, 0.0 }
0x1724   : > { %1935 = vrot.lane.b32.xlu0 %v4661_v35, %s5024_s24 }
0x172b   : > { %2265 = vrot.lane.b32.xlu1 %v4661_v35, %s5025_s12  ;;  %s2929_s12 = sand.u32 1, %s4176_s9  }
0x172f   : > { %3907 = vrot.lane.b32.xlu1 %v3906_v40, %s5027_s21  ;;  %v3209_v40 = vld [vmem:[%s4993_s2 + $0xd] ss:$0 sm:$0xff] }
0x1743   : > { %2261 = vadd.xlane.f32.xlu0 %v2260_v23 }
0x1759   : > { %2430 = vrot.lane.b32.xlu0 %v4661_v35, %s5026_s22  ;;  %s4882_s22 = sshll.u32 %s4176_s9, 7  ;;  %s4900_s9 = scalar_lea.sflag [#allocation5], %s2929_s12 }
0x175d   : > { %3912 = vrot.lane.b32.xlu0 %v3911_v46, %s5027_s21 }
0x179b   : > { %v1932_v25 = vpop.xlane.xlu0 %1931 }
0x179c   : > { %3948 = vrcp.f32 %v1932_v25  ;;  %v3175_v25 = vld [vmem:[%s4996_s5 + $0x88] sm:$0xff] }
0x179f   : > { %v1936_v26 = vpop.permute.xlu0 %1935  ;;  %v2097_v27 = vpop.xlane.xlu1 %2096 }
0x17a0   : > { %3950 = vrcp.f32 %v2097_v27  ;;  %3575 = vmatpush3.msra.mxu1 %v1936_v26 }
0x17a1   : > { %3584 = vmatprep.subr.mxu1 %v4089_v14 }
0x17a6   : > { %v3949_v28 = vpop.eup %3948 }
0x17a7   : > { %v1934_v19 = vmul.f32 %v3949_v28, %v3941_v47  ;;  %v2427_v30 = vpop.xlane.xlu1 %2426 }
0x17a9   : > { %3577 = vmatmul.mubr.msk.f32.vlgmr.msra.gmra.mrb[26].mxu1 %vm557_vm3, %v1934_v19 }
0x17aa   : > { %v3951_v31 = vpop.eup %3950  ;;  %3585 = vmatpush3.msra.mxu1 %v2101_v24  ;;  %3586 = vmatprep.mubr.msk.f32.mxu1 %vm4088_vm0, %v4089_v14  ;;  %v3174_v24 = vld [vmem:[%s4996_s5 + $0x80] sm:$0xff] }
0x17ab   : > { %v2099_v32 = vmul.f32 %v3951_v31, %v3943_v12  ;;  %v2266_v33 = vpop.permute.xlu1 %2265  ;;  %3594 = vmatprep.subr.mxu1 %v4089_v14  ;;  %v3792_v26 = vpack.c.bf16 %v3175_v25, %v3174_v24 }
0x17ad   : > { %3587 = vmatmul.mubr.msk.f32.vlgmr.msra.gmra.mrb[28].mxu1 %vm557_vm3, %v2099_v32 }
0x17ae   : > { %3595 = vmatpush3.msra.mxu1 %v2266_v33  ;;  %3596 = vmatprep.mubr.msk.f32.mxu1 %vm4088_vm0, %v4089_v14 }
0x17af   : > { %3604 = vmatprep.subr.mxu1 %v4089_v14  ;;  %v3908_v48 = vpop.permute.xlu1 %3907 }
0x17b0   : > { %v3910_v49 = vunpack.i.h.bf16 %v3908_v48  ;;  %v3909_v29 = vunpack.i.l.bf16 %v3908_v48 }
0x17b2   : > { %v3780_v50 = vpack.c.bf16 %v3910_v49, %v3909_v29  ;;  %v3176_v49 = vld [vmem:[%s4996_s5 + $0x90] sm:$0xff]  ;;  %v3177_v29 = vld [vmem:[%s4996_s5 + $0x98] sm:$0xff] }
0x17b4   : > { %3781 = vmatpush3.bf16.msra.mxu0 %v3780_v50  ;;  %v3795_v50 = vpack.c.bf16 %v3177_v29, %v3176_v49  ;;  %v3213_v49 = vld [vmem:[%s4993_s2 + $0x10] ss:$0 sm:$0xff] }
0x17b5   : > { %3782 = vmatprep.subr.bf16.mxu0 %v4087_v4 }
0x17d0   : > { %v2262_v35 = vpop.xlane.xlu0 %2261 }
0x17d1   : > { %3952 = vrcp.f32 %v2262_v35 }
0x17d2   : > { %3954 = vrcp.f32 %v2427_v30 }
0x17d4   : > { %v2431_v38 = vpop.permute.xlu0 %2430 }
0x17d8   : > { %v3913_v51 = vpop.permute.xlu0 %3912 }
0x17d9   : > { %v3915_v52 = vunpack.i.h.bf16 %v3913_v51  ;;  %v3914_v53 = vunpack.i.l.bf16 %v3913_v51  ;;  %v3178_v51 = vld [vmem:[%s4996_s5 + $0xa0] sm:$0xff] }
0x17db   : > { %v3953_v36 = vpop.eup %3952  ;;  %v3783_v54 = vpack.c.bf16 %v3915_v52, %v3914_v53  ;;  %v3180_v53 = vld [vmem:[%s4996_s5 + $0xb0] sm:$0xff] }
0x17dc   : > { %v2264_v37 = vmul.f32 %v3953_v36, %v3947_v22  ;;  %v3955_v34 = vpop.eup %3954  ;;  %v3172_v22 = vld [vmem:[%s4995_s4 + $0x30] sm:$0xff] }
0x17dd   : > { %v2429_v39 = vmul.f32 %v3955_v34, %v3945_v15  ;;  %3784 = vmatpush3.bf16.msra.mxu0 %v3783_v54  ;;  %v1687_v15 = vmul.f32 %v1686_v2, %v1686_v2  ;;  %v3181_v54 = vld [vmem:[%s4996_s5 + $0xb8] sm:$0xff] }
0x17de   : > { %3597 = vmatmul.mubr.msk.f32.vlgmr.msra.gmra.mrb[30].mxu1 %vm557_vm3, %v2264_v37  ;;  %3791 = vmatprep.subr.bf16.mxu0 %v4087_v4 }
0x17df   : > { %3605 = vmatpush3.msra.mxu1 %v2431_v38  ;;  %3606 = vmatprep.mubr.msk.f32.mxu1 %vm4088_vm0, %v4089_v14  ;;  %v1688_v16 = vsel %vm452_vm2, %v1687_v15, 0.0  ;;  %v3208_v38 = vld [vmem:[%s4993_s2 + $0xc] ss:$0 sm:$0xff] }
0x17e0   : > { %3785 = vmatprep.subr.bf16.mxu1 %v4087_v4 }
0x17e2   : > { %3607 = vmatmul.mubr.msk.f32.vlgmr.msra.gmra.mrb[32].mxu1 %vm557_vm3, %v2429_v39 }
0x17e3   : > { %3628 = vmatprep.mubr.msk.f32.mxu1 %vm4088_vm0, %v4089_v14  ;;  %3787 = vmatpush3.bf16.msra.mxu1 %v3786_v43 }
0x17e4   : > { %3788 = vmatprep.subr.bf16.mxu1 %v4087_v4 }
0x187c   : > { %v2007_v20 = vpop.f32.mrb[26].mxu1 }
0x187d   : > { %v3578_v42 = vpop.f32.mrb[27].mxu1 }
0x187e   : > { %v3182_v42 = vld [vmem:[%s4996_s5 + $0xc0] sm:$0xff] }
0x1880   : > { %v2172_v55 = vpop.f32.mrb[28].mxu1 }
0x1881   : > { %2507 = vrot.lane.b32.xlu1 %v2172_v55, %s5028_s26  ;;  %v3588_v45 = vpop.f32.mrb[29].mxu1  ;;  %v3183_v55 = vld [vmem:[%s4996_s5 + $0xc8] sm:$0xff]  ;;  %s4107_s26 = smov [#allocation4]  }
0x1882   : > { %v3184_v45 = vld [vmem:[%s4996_s5 + $0xd0] sm:$0xff] }
0x18b1   : > { %v2337_v21 = vpop.f32.mrb[30].mxu1 }
0x18b2   : > { %2511 = vrot.lane.b32.xlu0 %v2337_v21, %s5029_s25  ;;  %v3598_v56 = vpop.f32.mrb[31].mxu1  ;;  %v3804_v21 = vpack.c.bf16 %v3183_v55, %v3182_v42  ;;  %s3966_s25 = sshll.u32 %s4107_s26, 4  ;;  %s3967_s25 = int_to_ptr.vmem [resolvable:$false] %s3966_s25 }
0x18b3   : > { %v3185_v56 = vld [vmem:[%s4996_s5 + $0xd8] sm:$0xff] }
0x18b5   : > { %v2502_v57 = vpop.f32.mrb[32].mxu1 }
0x18b6   : > { %2515 = vrot.lane.b32.xlu1 %v2502_v57, %s5030_s19  ;;  %v3608_v58 = vpop.f32.mrb[33].mxu1  ;;  %v3807_v57 = vpack.c.bf16 %v3185_v56, %v3184_v45  ;;  %s2961_s19 = sshll.u32 %s307_s13, 4  ;;  %s3968_s13 = scalar_lea.vmem %s3967_s25, 256  ;;  %s4892_s19 = int_to_ptr.vmem [resolvable:$true] %s2961_s19 }
0x18b7   : > { %v3186_v58 = vld [vmem:[%s4996_s5 + $0xe0] sm:$0xff]  ;;  %p3969_p0 = scmp.lt.s32.totalorder %s4892_s19, %s3967_s25 }
0x18f3   : > { %v2508_v59 = vpop.permute.xlu1 %2507 }
0x18f4   : > { %v2518_v62 = vsel %vm557_vm3, %v2007_v20, %v2508_v59  ;;  %v3801_v20 = vpack.c.bf16 %v3181_v54, %v3180_v53  ;;  %v3187_v59 = vld [vmem:[%s4996_s5 + $0xe8] sm:$0xff] }
0x1924   : > { %v2512_v61 = vpop.permute.xlu0 %2511 }
0x1925   : > { %v2519_v63 = vsel %vm1227_vm5, %v2518_v62, %v2512_v61  ;;  %v3810_v61 = vpack.c.bf16 %v3187_v59, %v3186_v58  ;;  %v3188_v62 = vld [vmem:[%s4996_s5 + $0xf0] sm:$0xff] }
0x1928   : > { %v2516_v0 = vpop.permute.xlu1 %2515 }
0x1929   : > { %v2520_v1 = vsel %vm1229_vm6, %v2519_v63, %v2516_v0  ;;  %v3189_v63 = vld [vmem:[%s4996_s5 + $0xf8] sm:$0xff] }
0x192a   : > { %3618 = vmatmul.mubr.msk.f32.vlgmr.msra.gmra.mrb[14].mxu0 %vm452_vm2, %v2520_v1  ;;  %v3813_v0 = vpack.c.bf16 %v3189_v63, %v3188_v62  ;;  %v3210_v1 = vld [vmem:[%s4993_s2 + $0xe] ss:$0 sm:$0xff] }
0x192b   : > { %3663 = vmatprep.mubr.msk.f32.mxu0 %vm4088_vm0, %v4089_v14  ;;  %3793 = vmatpush3.bf16.msra.mxu0 %v3792_v26 }
0x192c   : > { %3794 = vmatprep.subr.bf16.mxu0 %v4087_v4 }
0x192f   : > { %3796 = vmatpush3.bf16.msra.mxu0 %v3795_v50  ;;  %v3214_v50 = vld [vmem:[%s4993_s2 + $0x11] ss:$0 sm:$0xff] }
0x1930   : > { %3797 = vmatprep.subr.bf16.mxu0 %v4087_v4 }
0x19fd   : > { %v2610_v5 = vpop.f32.mrb[14].mxu0 }
0x19fe   : > { %v2611_v6 = vadd.f32 %v3206_v3, %v2610_v5  ;;  %v3619_v7 = vpop.f32.mrb[15].mxu0 }
0x1a00   : > { %v4755_v8 = vadd.f32 %v2611_v6, %v4617_v10 }
0x1a02   : > { %v2615_v9 = vsel %vm452_vm2, %v4755_v8, 0.0 }
0x1a03   : > { %2616 = vadd.xlane.f32.xlu0 %v2615_v9 }
0x1a90   : > { %v2617_v44 = vpop.xlane.xlu0 %2616 }
0x1a91   : > { %v2618_v47 = vmul.f32 0.03125, %v2617_v44 }
0x1a93   : > { %v2619_v11 = vsub.f32 %v4755_v8, %v2618_v47 }
0x1a95   : > { %v2620_v12 = vmul.f32 %v2619_v11, %v2619_v11 }
0x1a97   : > { %v2621_v13 = vsel %vm452_vm2, %v2620_v12, 0.0 }
0x1a98   : > { %2622 = vadd.xlane.f32.xlu1 %v2621_v13 }
0x1a9c   : > { %1689 = vadd.xlane.f32.xlu1 %v1688_v16  ;;  %v3212_v16 = vld [vmem:[%s4993_s2 + $0xf] ss:$0 sm:$0xff] }
0x1aad   : > { %2909 = vrot.lane.b32.xlu1 %v4617_v10, %s5027_s21  ;;  %v3173_v10 = vld [vmem:[%s4995_s4 + $0x38] sm:$0xff] }
0x1aae   : > { %v3789_v23 = vpack.c.bf16 %v3173_v10, %v3172_v22 }
0x1ab0   : > { %3790 = vmatpush3.bf16.msra.mxu1 %v3789_v23 }
0x1ab1   : > { %3815 = vmatprep.subr.bf16.mxu1 %v4087_v4 }
0x1b25   : > { %v2623_v27 = vpop.xlane.xlu1 %2622 }
0x1b26   : > { %v2624_v28 = vmul.f32 0.03125, %v2623_v27 }
0x1b28   : > { %v2625_v19 = vadd.f32 1e-05, %v2624_v28  ;;  %v1700_v28 = vand.u32 2147483647, %v4605_v60  ;;  %v3218_v60 = vld [vmem:[%s4995_s4 + $0x78] sm:$0xff] }
0x1b29   : > { %v1690_v30 = vpop.xlane.xlu1 %1689 }
0x1b2a   : > { %3956 = vrsqrt.f32 %v2625_v19  ;;  %v1691_v31 = vrot.slane %v1690_v30, 4  ;;  %v3215_v19 = vld [vmem:[%s4995_s4 + $0x60] sm:$0xff] }
0x1b2c   : > { %v1692_v32 = vadd.f32 %v1691_v31, %v1690_v30  ;;  %v3217_v31 = vld [vmem:[%s4995_s4 + $0x70] sm:$0xff] }
0x1b2e   : > { %v1693_v33 = vrot.slane %v1692_v32, 2 }
0x1b30   : > { %v1694_v35 = vadd.f32 %v1693_v33, %v1692_v32  ;;  %v3819_v32 = vpack.c.bf16 %v3218_v60, %v3217_v31 }
0x1b32   : > { %v1695_v36 = vrot.slane %v1694_v35, 1 }
0x1b34   : > { %v3957_v37 = vpop.eup %3956  ;;  %v1696_v34 = vadd.f32 %v1695_v36, %v1694_v35 }
0x1b35   : > { %v2627_v39 = vmul.f32 %v3957_v37, %v2619_v11 }
0x1b36   : > { %3821 = vpush %v1696_v34 }
0x1b37   : > { %v2632_v46 = vmul.f32 %v3208_v38, %v2627_v39 }
0x1b39   : > { %v2637_v48 = vadd.f32 %v3209_v40, %v2632_v46 }
0x1b3b   : > { %3629 = vmatmul.mubr.msk.f32.vlgmr.msra.gmra.mrb[34].mxu1 %vm452_vm2, %v2637_v48 }
0x1b3c   : > { %3674 = vmatprep.mubr.msk.f32.mxu1 %vm4088_vm0, %v4089_v14  ;;  %v3179_v14 = vld [vmem:[%s4996_s5 + $0xa8] sm:$0xff] }
0x1b3d   : > { %v3798_v52 = vpack.c.bf16 %v3179_v14, %v3178_v51 }
0x1b3f   : > { %3799 = vmatpush3.bf16.msra.mxu0 %v3798_v52  ;;  %v2910_v52 = vpop.permute.xlu1 %2909 }
0x1b40   : > { %3800 = vmatprep.subr.bf16.mxu0 %v4087_v4 }
0x1b43   : > { %3802 = vmatpush3.bf16.msra.mxu0 %v3801_v20  ;;  %v2916_v20 = vsel %vm452_vm2, %v4541_v41, %v2910_v52 }
0x1b44   : > { %3803 = vmatprep.subr.bf16.mxu0 %v4087_v4 }
0x1b47   : > { %3805 = vmatpush3.bf16.msra.mxu0 %v3804_v21 }
0x1b48   : > { %3806 = vmatprep.subr.bf16.mxu0 %v4087_v4 }
0x1b4b   : > { %3808 = vmatpush3.bf16.msra.mxu0 %v3807_v57 }
0x1b4c   : > { %3809 = vmatprep.subr.bf16.mxu0 %v4087_v4 }
0x1b4f   : > { %3811 = vmatpush3.bf16.msra.mxu0 %v3810_v61 }
0x1b50   : > { %3812 = vmatprep.subr.bf16.mxu0 %v4087_v4 }
0x1b53   : > { %3814 = vmatpush3.bf16.msra.mxu0 %v3813_v0 }
0x1b67   : > { %s3822_s20 = spop %3821 }
0x1b68   : > { %v1698_v54 = vstv %s3822_s20  ;;  %s4898_s20 = scalar_lea.hbm %s4997_s6, %s4882_s22 }
0x1b69   : > { %v1699_v55 = vmul.f32 0.001953125, %v1698_v54 }
0x1c0e   : > { %v2711_v3 = vpop.f32.mrb[34].mxu1 }
0x1c0f   : > { %v2712_v5 = vadd.f32 %v3210_v1, %v2711_v3  ;;  %v3630_v6 = vpop.f32.mrb[35].mxu1 }
0x1c11   : > { %v2715_v7 = vmul.f32 %v2712_v5, %v2712_v5 }
0x1c13   : > { %v2716_v9 = vmul.f32 %v2715_v7, %v2712_v5 }
0x1c15   : > { %v2717_v44 = vmul.f32 0.044715, %v2716_v9 }
0x1c17   : > { %v2718_v47 = vadd.f32 %v2717_v44, %v2712_v5 }
0x1c19   : > { %v2719_v11 = vmul.f32 0.7978846, %v2718_v47 }
0x1c1b   : > { %3958 = vtanh.f32 %v2719_v11 }
0x1c25   : > { %v3959_v2 = vpop.eup %3958 }
0x1c26   : > { %v2721_v12 = vadd.f32 1.0, %v3959_v2 }
0x1c28   : > { %v2722_v13 = vmul.f32 0.5, %v2721_v12 }
0x1c2a   : > { %v2723_v15 = vmul.f32 %v2722_v13, %v2712_v5 }
0x1c2c   : > { %3664 = vmatmul.mubr.f32.vlgmr.msra.gmra.mrb[16].mxu0 %v2723_v15 }
0x1cff   : > { %v2794_v17 = vpop.f32.mrb[16].mxu0 }
0x1d00   : > { %v2795_v18 = vadd.f32 %v3212_v16, %v2794_v17  ;;  %v3665_v43 = vpop.f32.mrb[17].mxu0 }
0x1d02   : > { %v2798_v22 = vadd.f32 %v2795_v18, %v4755_v8  ;;  %v3216_v8 = vld [vmem:[%s4995_s4 + $0x68] sm:$0xff] }
0x1d03   : > { %v3816_v30 = vpack.c.bf16 %v3216_v8, %v3215_v19 }
0x1d04   : > { %v2801_v10 = vsel %vm452_vm2, %v2798_v22, 0.0 }
0x1d05   : > { %2802 = vadd.xlane.f32.xlu0 %v2801_v10  ;;  %3817 = vmatpush3.bf16.msra.mxu1 %v3816_v30 }
0x1d06   : > { %3818 = vmatprep.subr.bf16.mxu1 %v4087_v4 }
0x1d09   : > { %3820 = vmatpush3.bf16.msra.mxu1 %v3819_v32 }
0x1d92   : > { %v2803_v23 = vpop.xlane.xlu0 %2802 }
0x1d93   : > { %v2804_v24 = vmul.f32 0.03125, %v2803_v23 }
0x1d95   : > { %v2805_v25 = vsub.f32 %v2798_v22, %v2804_v24 }
0x1d97   : > { %v2806_v26 = vmul.f32 %v2805_v25, %v2805_v25 }
0x1d99   : > { %v2807_v27 = vsel %vm452_vm2, %v2806_v26, 0.0 }
0x1d9a   : > { %2808 = vadd.xlane.f32.xlu0 %v2807_v27 }
0x1d9e   : > { %1701 = vadd.xlane.f32.xlu0 %v1700_v28 }
0x1db4   : > { %2913 = vrot.lane.b32.xlu0 %v2798_v22, %s5024_s24  ;;  %s4888_s24 = scalar_lea.hbm %s4998_s7, %s4882_s22 }
0x1e27   : > { %v2809_v33 = vpop.xlane.xlu0 %2808 }
0x1e28   : > { %v2810_v35 = vmul.f32 0.03125, %v2809_v33 }
0x1e2a   : > { %v2811_v36 = vadd.f32 1e-05, %v2810_v35 }
0x1e2b   : > { %v1702_v37 = vpop.xlane.xlu0 %1701 }
0x1e2c   : > { %3960 = vrsqrt.f32 %v2811_v36  ;;  %v1703_v34 = vrot.slane %v1702_v37, 4 }
0x1e2e   : > { %v1704_v38 = vadd.f32 %v1703_v34, %v1702_v37 }
0x1e2f   : > { %v2914_v53 = vpop.permute.xlu0 %2913 }
0x1e30   : > { %v1705_v39 = vrot.slane %v1704_v38, 2  ;;  %v2918_v42 = vsel %vm2917_vm7, %v2916_v20, %v2914_v53 }
0x1e31   : > { %v2920_v56 = vsel %vm2919_vm8, %v2918_v42, %v1699_v55 }
0x1e32   : > { %v1706_v40 = vadd.f32 %v1705_v39, %v1704_v38 }
0x1e34   : > { %v1707_v4 = vrot.slane %v1706_v40, 1 }
0x1e36   : > { %v3961_v46 = vpop.eup %3960  ;;  %v1708_v48 = vadd.f32 %v1707_v4, %v1706_v40 }
0x1e37   : > { %v2813_v29 = vmul.f32 %v3961_v46, %v2805_v25 }
0x1e38   : > { %3823 = vpush %v1708_v48 }
0x1e39   : > { %v2818_v51 = vmul.f32 %v3213_v49, %v2813_v29 }
0x1e3b   : > { %v2823_v14 = vadd.f32 %v3214_v50, %v2818_v51 }
0x1e3d   : > { %3675 = vmatmul.mubr.msk.f32.vlgmr.msra.gmra.mrb[36].mxu1 %vm452_vm2, %v2823_v14 }
0x1e69   : > { %s3824_s17 = spop %3823 }
0x1e6a   : > { %v1710_v45 = vstv %s3824_s17  ;;  %s3962_s17 = scalar_lea.vmem %s4892_s19, 128 }
0x1e6b   : > { %v1711_v21 = vmul.f32 0.000625, %v1710_v45  ;;  %p3963_p11 = scmp.ne.s32.totalorder %s4892_s19, %s3962_s17  ;;  %p3970_p1 = scmp.lt.s32.totalorder %s3968_s13, %s3962_s17 }
0x1e6d   : > { %v2922_v57 = vsel %vm2921_vm9, %v2920_v56, %v1711_v21  ;;  %p3964_p12 = pnand %p3963_p11, %p4195_p5  ;;  %p3971_p2 = por %p3970_p1, %p3969_p0 }
0x1e6e   : > { %2923 = vst [vmem:[%s5016_s23] sm:$0xff] %v2922_v57 }
0x1e6f   : > { %p3965_p13 = pneg %p3964_p12 }
0x1e71   : > { %p3972_p3 = pnand %p3971_p2, %p3965_p13 }
0x1e73   : > { %3975 = shalt.err (!%p3972_p3)
}
0x1e74   : > { %s3976_s12 = scalar_lea.hbm %s4888_s24, 128  ;;  %s3980_s26 = scalar_lea.hbm %s4998_s7, 256 }
0x1e75   : > { %p3977_p4 = scmp.ne.s32.totalorder %s4888_s24, %s3976_s12  ;;  %p3981_p9 = scmp.lt.u32.totalorder %s4888_s24, %s4998_s7 }
0x1e76   : > { %p3982_p10 = scmp.lt.u32.totalorder %s3980_s26, %s3976_s12  ;;  %p3984_p12 = scmp.lt.u32.totalorder %s3976_s12, %s4888_s24 }
0x1e77   : > { %p3978_p7 = pnand %p3977_p4, %p4195_p5 }
0x1e78   : > { %p3983_p11 = por %p3982_p10, %p3981_p9 }
0x1e79   : > { %p3979_p8 = pneg %p3978_p7 }
0x1e7a   : > { %p3985_p13 = por %p3984_p12, %p3983_p11 }
0x1e7c   : > { %p3986_p0 = pnand %p3985_p13, %p3979_p8 }
0x1e7e   : > { %3989 = shalt.err (!%p3986_p0)
}
0x1e7f   : > { %3826 = dma.vmem_to_hbm [thread:$0]  (%p4195_p5), %s4892_s19, 128, %s4888_s24, %s4900_s9  }
0x1e80   : > { %s5031_s17 = scalar_lea.vmem [#allocation2], %s4603_s18  ;;  %s5032_s23 = sand.u32 1, %s4076_s28  }
0x1e81   : > { %s2948_s13 = sshll.u32 %s5031_s17, 4  ;;  %s2925_s10 = scalar_lea.sflag [#allocation3], %s5032_s23  ;;  %s2949_s13 = int_to_ptr.vmem [resolvable:$true] %s2948_s13 }
0x1e82   : > { %s3990_s21 = scalar_lea.vmem %s2949_s13, 128  ;;  %s4108_s12 = smov [#allocation2]  }
0x1e83   : > { %p3991_p1 = scmp.ne.s32.totalorder %s2949_s13, %s3990_s21  ;;  %s3994_s26 = sshll.u32 %s4108_s12, 4  ;;  %s3995_s26 = int_to_ptr.vmem [resolvable:$false] %s3994_s26 }
0x1e84   : > { %s3996_s25 = scalar_lea.vmem %s3995_s26, 256  ;;  %p3997_p4 = scmp.lt.s32.totalorder %s2949_s13, %s3995_s26 }
0x1e85   : > { %p3992_p2 = pnand %p3991_p1, %p4195_p5  ;;  %p3998_p7 = scmp.lt.s32.totalorder %s3996_s25, %s3990_s21 }
0x1e87   : > { %p3993_p3 = pneg %p3992_p2  ;;  %p3999_p8 = por %p3998_p7, %p3997_p4 }
0x1e89   : > { %p4000_p9 = pnand %p3999_p8, %p3993_p3 }
0x1e8b   : > { %4003 = shalt.err (!%p4000_p9)
}
0x1e8c   : > { %s4004_s24 = scalar_lea.hbm %s4898_s20, 128  ;;  %s4008_s23 = scalar_lea.hbm %s4997_s6, 256 }
0x1e8d   : > { %p4005_p10 = scmp.ne.s32.totalorder %s4898_s20, %s4004_s24  ;;  %p4009_p13 = scmp.lt.u32.totalorder %s4898_s20, %s4997_s6 }
0x1e8e   : > { %p4010_p0 = scmp.lt.u32.totalorder %s4008_s23, %s4004_s24  ;;  %p4012_p2 = scmp.lt.u32.totalorder %s4004_s24, %s4898_s20 }
0x1e8f   : > { %p4006_p11 = pnand %p4005_p10, %p4195_p5 }
0x1e90   : > { %p4011_p1 = por %p4010_p0, %p4009_p13 }
0x1e91   : > { %p4007_p12 = pneg %p4006_p11 }
0x1e92   : > { %p4013_p3 = por %p4012_p2, %p4011_p1 }
0x1e94   : > { %p4014_p4 = pnand %p4013_p3, %p4007_p12 }
0x1e96   : > { %4017 = shalt.err (!%p4014_p4)
}
0x1e97   : > { %3825 = dma.vmem_to_hbm [thread:$0]  (%p4195_p5), %s2949_s13, 128, %s4898_s20, %s2925_s10   ;;  %v3219_v41 = vld [vmem:[%s4993_s2 + $0x12] ss:$0 sm:$0xff] }
0x1e98   : > { %s314_s19 = scalar_lea.vmem [#allocation6], %s4603_s18  ;;  %s2972_s12 = scalar_lea.hbm %s4999_s8, %s4882_s22 }
0x1e99   : > { %s2974_s17 = sshll.u32 %s314_s19, 4  ;;  %s4109_s18 = smov [#allocation6]   ;;  %s4949_s17 = int_to_ptr.vmem [resolvable:$true] %s2974_s17 }
0x1e9a   : > { %s4018_s20 = scalar_lea.vmem %s4949_s17, 128  ;;  %s4022_s13 = sshll.u32 %s4109_s18, 4  ;;  %s4023_s13 = int_to_ptr.vmem [resolvable:$false] %s4022_s13 }
0x1e9b   : > { %p4019_p7 = scmp.ne.s32.totalorder %s4949_s17, %s4018_s20  ;;  %s4024_s10 = scalar_lea.vmem %s4023_s13, 256 }
0x1e9c   : > { %p4025_p10 = scmp.lt.s32.totalorder %s4949_s17, %s4023_s13  ;;  %p4026_p11 = scmp.lt.s32.totalorder %s4024_s10, %s4018_s20 }
0x1e9d   : > { %p4020_p8 = pnand %p4019_p7, %p4195_p5 }
0x1e9e   : > { %p4027_p12 = por %p4026_p11, %p4025_p10 }
0x1e9f   : > { %p4021_p9 = pneg %p4020_p8 }
0x1ea1   : > { %p4028_p13 = pnand %p4027_p12, %p4021_p9 }
0x1f10   : > { %v2903_v58 = vpop.f32.mrb[36].mxu1 }
0x1f11   : > { %v2904_v59 = vadd.f32 %v3219_v41, %v2903_v58  ;;  %v3676_v61 = vpop.f32.mrb[37].mxu1 }
0x1f13   : > { %2907 = vst [vmem:[%s314_s19] sm:$0xff] %v2904_v59 }
0x1f14   : > { %4031 = shalt.err (!%p4028_p13)
}
0x1f15   : > { %s4032_s26 = scalar_lea.hbm %s2972_s12, 128  ;;  %s4036_s25 = scalar_lea.hbm %s4999_s8, 256 }
0x1f16   : > { %p4033_p0 = scmp.ne.s32.totalorder %s2972_s12, %s4032_s26  ;;  %p4037_p3 = scmp.lt.u32.totalorder %s2972_s12, %s4999_s8 }
0x1f17   : > { %p4038_p4 = scmp.lt.u32.totalorder %s4036_s25, %s4032_s26  ;;  %p4040_p8 = scmp.lt.u32.totalorder %s4032_s26, %s2972_s12 }
0x1f18   : > { %p4034_p1 = pnand %p4033_p0, %p4195_p5 }
0x1f19   : > { %p4039_p7 = por %p4038_p4, %p4037_p3 }
0x1f1a   : > { %p4035_p2 = pneg %p4034_p1 }
0x1f1b   : > { %p4041_p10 = por %p4040_p8, %p4039_p7 }
0x1f1d   : > { %p4042_p9 = pnand %p4041_p10, %p4035_p2 }
0x1f1f   : > { %4045 = shalt.err (!%p4042_p9)
}
0x1f20   : > { %3827 = dma.vmem_to_hbm [thread:$0]  (%p4195_p5), %s4949_s17, 128, %s2972_s12, %s4900_s9  }
0x1f21 PF: > { %p3841_p11 = scmp.ge.s32.totalorder %s4084_s30, 2  ;;  %s2986_s23 = sand.u32 1, %s4072_s27  }
0x1f22   : > { %s2987_s20 = scalar_lea.sflag [#allocation3], %s2986_s23 }
0x1f23   : > { %p3832_p12 = pnand %p3841_p11, %p4199_p6 }
0x1f25   : > { %4063 = dma.done.wait (!%p3832_p12), %s2987_s20, 128  }
0x1f26   : > { %4065 = vsyncadd (!%p3832_p12), %s2987_s20, 4294967168  ;;  %s5033_s18 = sadd.s32 4294967294, %s4084_s30  }
0x1f27   : > { %s2995_s13 = sand.u32 1, %s5033_s18  }
0x1f28   : > { %s2996_s10 = scalar_lea.sflag [#allocation5], %s2995_s13 }
0x1f29   : > { %4067 = dma.done.wait (!%p3832_p12), %s2996_s10, 256  }
0x1f2a   : > { %4069 = vsyncadd (!%p3832_p12), %s2996_s10, 4294967040  ;;  %p22_p5 = scmp.ge.s32.totalorder %s4180_s11, 4   ;;  %s5034_s27 = smov %s4076_s28 }
0x1f2b   : > { %s5035_s28 = smov %s4080_s29  ;;  %s5036_s29 = smov %s4193_s14 }
0x1f2c   : > { %s5037_s30 = smov %s4180_s11  ;;  %24 = sbr.rel (!%p22_p5) target bundleno = 5 (0x5), region = 118 }
0x1f33   :  { %3010 = vsyncpa [#allocation3], 1 }
0x1f34   :  { %3012 = vsyncpa [#allocation3 + $0x1], 1 }
0x1f35   :  { %3013 = vsyncpa [#allocation5], 1 }
0x1f36   :  { %3015 = vsyncpa [#allocation5 + $0x1], 1 }

</bundles_post_ra>
